<compile_context>
chip_gen: v7x
topology: tpu7x:2x2x1
jax: 0.10.0
libtpu: 0.0.40
codegen_flags: <defaults>
</compile_context>

<pallas_src>
import functools

import jax
import jax.numpy as jnp
from jax.experimental import pallas as pl
from jax.experimental.pallas import tpu as pltpu

# ---- model hyper-parameters (small demo sizes) ----
NUM_LAYERS = 4
HIDE_DIM = 32
NUM_DRUGS = 8
NUM_PROTEINS = 8
NUM_NODES = NUM_DRUGS + NUM_PROTEINS
ATTR_DIM = 64
KG_DIM = 200
BATCH = 8
BETA = 0.5
PRELU_SLOPE = 0.25          # fresh nn.PReLU() default weight

# ---- packed-slab layouts (all section starts are multiples of 8 sublanes) ----
H = HIDE_DIM
FEAT_W = ATTR_DIM + KG_DIM                 # 264
FEAT_COLS = 2 * FEAT_W + 8                 # 536: [drug feats | protein feats | bias indicators | pad]
DRUG_ONE_COL = 2 * FEAT_W                  # 528  (=1 on drug rows -> adds drug proj biases)
PROT_ONE_COL = 2 * FEAT_W + 1              # 529  (=1 on protein rows -> adds protein proj biases)

# w64 slab (lane width 2H = 64)
OFF_WPROJ = 0
OFF_WMN = OFF_WPROJ + FEAT_COLS            # 536  meta-net weights [W_mnu | W_mni]
OFF_BMN = OFF_WMN + 3 * H                  # 632  meta-net bias row
OFF_WP1 = OFF_BMN + 8                      # 640  pred Linear(2H,H), padded to 64 cols
OFF_TAIL = OFF_WP1 + 2 * H                 # 704  row0=[b_p1 | w_p2], row1[0]=b_p2
W64_ROWS = OFF_TAIL + 8                    # 712

# w384 slab (lane width 12H = 384)
OFF_WPRE = 0                               # block-diag [W_pre_drugs | W_pre_proteins]
OFF_BPRE = OFF_WPRE + 2 * H                # 64
OFF_WOUT = OFF_BPRE + 8                    # 72   block-diag output weights
OFF_BOUT = OFF_WOUT + 12 * H               # 456
W384_ROWS = OFF_BOUT + 8                   # 464


def _full_spec(shape):
    """BlockSpec covering the whole array (grid=(1,))."""
    return pl.BlockSpec(shape, lambda i, _n=len(shape): (0,) * _n)


# --------------------------------------------------------------------------- fused forward kernel
def _fused_forward_kernel(
    feat_ref,     # (N, FEAT_COLS) f32  column-blocked node features (+ bias indicator cols)
    graph_ref,    # (N, 2N)        f32  [A_norm | B_adj]
    samp_ref,     # (B, 2)         int32
    lab_ref,      # (B, 1)         f32
    w64_ref,      # (W64_ROWS, 2H) f32
    w384_ref,     # (W384_ROWS, 12H) f32
    out_ref,      # (1, 128)       f32  lanes 0..B-1 = prob, lane B = loss
    *, num_layers, hide_dim, num_drugs, num_proteins, beta, batch,
):
    H = hide_dim
    N = num_drugs + num_proteins
    f32 = jnp.float32

    def mm(a, b):
        return jnp.dot(a, b, preferred_element_type=f32)

    # ---- attr + KG projections: 4 Linears fused into ONE matmul (biases via indicator cols) ----
    proj = mm(feat_ref[...], w64_ref[OFF_WPROJ:OFF_WPROJ + FEAT_COLS, :])     # (N, 2H)
    x = proj[:, 0:H]              # attr projections -> LightGCN input
    kg = proj[:, H:2 * H]         # KG projections

    # ---- LightGCN on the full (N,N) normalized bipartite adjacency: one matmul per layer ----
    adj = graph_ref[:, 0:N]
    alpha = 1.0 / (num_layers + 1)
    g = x * alpha
    for _ in range(num_layers):
        x = mm(adj, x)
        g = g + x * alpha

    # ---- neighbour aggregation (DTI @ g_protein ; TDI @ g_drug) as one block matmul ----
    neigh = mm(graph_ref[:, N:2 * N], g)                                      # (N, H)

    # ---- meta_netu / meta_neti fused into one matmul on the lane-concatenated slab ----
    meta_in = jnp.concatenate([kg, g, neigh], axis=1)                         # (N, 3H)
    temb = (mm(meta_in, w64_ref[OFF_WMN:OFF_WMN + 3 * H, :])
            + w64_ref[OFF_BMN:OFF_BMN + 8, :][0:1, :])                        # (N, 2H)

    # ---- mlp/mlp1 (drugs) + mlp2/mlp3 (proteins): TWO wide block-diagonal matmuls ----
    h1 = (mm(temb, w384_ref[OFF_WPRE:OFF_WPRE + 2 * H, :])
          + w384_ref[OFF_BPRE:OFF_BPRE + 8, :][0:1, :])                       # (N, 12H)
    h1 = jnp.where(h1 > 0, h1, PRELU_SLOPE * h1)                              # fresh nn.PReLU()
    y = (mm(h1, w384_ref[OFF_WOUT:OFF_WOUT + 12 * H, :])
         + w384_ref[OFF_BOUT:OFF_BOUT + 8, :][0:1, :])                        # (N, 12H)

    def meta_apply(aux, yblk):
        # yblk (rows, 6H): cols [c*H,(c+1)H) = mlpX channel c of reshape(-1,H,3),
        #                  cols [3H+c*H,..)  = mlpX1 channel c of reshape(-1,3,H).
        m1 = [yblk[:, c * H:(c + 1) * H] for c in range(3)]
        m2 = [yblk[:, 3 * H + c * H:3 * H + (c + 1) * H] for c in range(3)]
        # F.normalize(p=2, dim=-1) over each original 3H-wide MLP output
        n1 = jnp.sum(m1[0] * m1[0] + m1[1] * m1[1] + m1[2] * m1[2], axis=1, keepdims=True)
        n2 = jnp.sum(m2[0] * m2[0] + m2[1] * m2[1] + m2[2] * m2[2], axis=1, keepdims=True)
        inv1 = jax.lax.rsqrt(jnp.maximum(n1, 1e-24))     # == 1 / max(||.||, 1e-12)
        inv2 = jax.lax.rsqrt(jnp.maximum(n2, 1e-24))
        m1 = [m * inv1 for m in m1]
        m2 = [m * inv2 for m in m2]
        # softmax over H (dim=1 of [N,H,3]) + weighted sum with aux -> per-channel scalars
        t1 = []
        for c in range(3):
            z = m1[c] + jnp.mean(m1[c], axis=0, keepdims=True)
            z = z - jnp.max(z, axis=1, keepdims=True)
            e = jnp.exp(z)
            w = e / jnp.sum(e, axis=1, keepdims=True)
            t1.append(jnp.sum(aux * w, axis=1, keepdims=True))
        # softmax over the 3 channels (dim=1 of [N,3,H]) and recombination
        zs = [m2[c] + jnp.mean(m2[c], axis=0, keepdims=True) for c in range(3)]
        mx = jnp.maximum(jnp.maximum(zs[0], zs[1]), zs[2])
        es = [jnp.exp(z - mx) for z in zs]
        num = t1[0] * es[0] + t1[1] * es[1] + t1[2] * es[2]
        return num / (es[0] + es[1] + es[2])

    nd = num_drugs
    kg_d, kg_p = kg[0:nd, :], kg[nd:N, :]
    tu = meta_apply(kg_d, y[0:nd, 0:6 * H])
    ti = meta_apply(kg_p, y[nd:N, 6 * H:12 * H])
    dr = beta * g[0:nd, :] + (1.0 - beta) * (kg_d + tu)
    pr = beta * g[nd:N, :] + (1.0 - beta) * (kg_p + ti)

    # ---- pred head: gather + Linear(2H,H) as two block matmuls, ReLU, Linear(H,1), Sigmoid ----
    # TODO(synk): nn.Dropout(0.2) in `pred` is treated as eval-mode identity.
    drpr = jnp.concatenate(
        [jnp.concatenate([dr, jnp.zeros_like(dr)], axis=1),
         jnp.concatenate([jnp.zeros_like(pr), pr], axis=1)], axis=0)          # (N, 2H)
    q = mm(drpr, w64_ref[OFF_WP1:OFF_WP1 + 2 * H, :])[:, 0:H]                 # rows 0:8 = dr@W1u, 8:16 = pr@W1v

    su = samp_ref[:, 0:1]
    sv = samp_ref[:, 1:2]
    col = jax.lax.broadcasted_iota(jnp.int32, (batch, N), 1)
    oh = jnp.logical_or(col == su, col == sv + num_drugs).astype(f32)         # (B, N), two ones per row
    pair = mm(oh, q)                                                          # (B, H) = u@W1u + v@W1v

    tail = w64_ref[OFF_TAIL:OFF_TAIL + 8, :]
    b_p1 = tail[0:1, 0:H]
    w2 = tail[0:1, H:2 * H]
    b_p2 = tail[1:2, 0:1]
    hidden = jnp.maximum(pair + b_p1, 0.0)
    logit = jnp.sum(hidden * w2, axis=1, keepdims=True) + b_p2                # (B, 1)
    p = jax.nn.sigmoid(logit)

    # ---- BCELoss(reduction='mean'); torch clamps the log terms at -100 ----
    yl = lab_ref[...]
    logp = jnp.maximum(jnp.log(p), -100.0)
    log1mp = jnp.maximum(jnp.log(1.0 - p), -100.0)
    per = yl * logp + (1.0 - yl) * log1mp                                     # (B, 1)

    # ---- single lane-dense output: lanes 0..B-1 = prob, lane B = loss ----
    lane = jax.lax.broadcasted_iota(jnp.int32, (batch, 128), 1)
    row = jax.lax.broadcasted_iota(jnp.int32, (batch, 128), 0)
    packed = jnp.where(lane == row, p, 0.0) + jnp.where(lane == batch, -per / batch, 0.0)
    out_ref[...] = jnp.sum(packed, axis=0, keepdims=True)


# --------------------------------------------------------------------------- wrapper
def model_forward(w64, w384, feat, graph, samples, labels):
    B = samples.shape[0]
    samp = samples.astype(jnp.int32)
    lab = labels.reshape(B, 1).astype(jnp.float32)
    args = (feat, graph, samp, lab, w64, w384)
    kern = functools.partial(
        _fused_forward_kernel,
        num_layers=NUM_LAYERS, hide_dim=HIDE_DIM, num_drugs=NUM_DRUGS,
        num_proteins=NUM_PROTEINS, beta=BETA, batch=B,
    )
    packed = pl.pallas_call(
        kern,
        grid=(1,),
        in_specs=[_full_spec(a.shape) for a in args],
        out_specs=_full_spec((1, 128)),
        out_shape=jax.ShapeDtypeStruct((1, 128), jnp.float32),
        compiler_params=pltpu.CompilerParams(dimension_semantics=("arbitrary",)),
        cost_estimate=pl.CostEstimate(flops=7_200_000, transcendentals=3_500,
                                      bytes_accessed=1_000_000),
    )(*args)
    return packed[0, :B], packed[0, B]


# --------------------------------------------------------------------------- params / data init
def _xavier_normal(key, fan_in, fan_out):
    std = (2.0 / (fan_in + fan_out)) ** 0.5
    return jax.random.normal(key, (fan_in, fan_out), jnp.float32) * std


def _init_linear(key, fan_in, fan_out, xavier=False):
    kw, kb = jax.random.split(key)
    bound = 1.0 / (fan_in ** 0.5)
    if xavier:
        w = _xavier_normal(kw, fan_in, fan_out)
    else:
        w = jax.random.uniform(kw, (fan_in, fan_out), jnp.float32, -bound, bound)
    b = jax.random.uniform(kb, (fan_out,), jnp.float32, -bound, bound)
    return w, b


def _init_mlp(key, in_dim, feat_dim, out_dim):
    k1, k2 = jax.random.split(key)
    w_pre, b_pre = _init_linear(k1, in_dim, feat_dim)
    w_out, b_out = _init_linear(k2, feat_dim, out_dim)
    return w_pre, b_pre, w_out, b_out


def _fuse_mlp_pair(mlp_a, mlp_b):
    """Fuse two MLPs sharing the same input into one wide MLP.

    mlp_a feeds reshape(-1, H, 3): its output columns are permuted so channel c becomes a
    contiguous H-wide block (new col c*H+h <- old col h*3+c).  mlp_b feeds reshape(-1, 3, H)
    which is already channel-contiguous.
    """
    wpa, bpa, woa, boa = mlp_a
    wpb, bpb, wob, bob = mlp_b
    h_idx = jnp.tile(jnp.arange(H), 3)
    c_idx = jnp.repeat(jnp.arange(3), H)
    perm = h_idx * 3 + c_idx
    w_pre = jnp.concatenate([wpa, wpb], axis=1)                              # (H, 6H)
    b_pre = jnp.concatenate([bpa, bpb])                                      # (6H,)
    w_out = jnp.zeros((6 * H, 6 * H), jnp.float32)
    w_out = w_out.at[:3 * H, :3 * H].set(woa[:, perm])
    w_out = w_out.at[3 * H:, 3 * H:].set(wob)
    b_out = jnp.concatenate([boa[perm], bob])                                # (6H,)
    return w_pre, b_pre, w_out, b_out


def make_params(key):
    keys = jax.random.split(key, 12)
    W_da, b_da = _init_linear(keys[0], ATTR_DIM, H, xavier=True)
    W_pa, b_pa = _init_linear(keys[1], ATTR_DIM, H, xavier=True)
    W_dk, b_dk = _init_linear(keys[2], KG_DIM, H, xavier=True)
    W_pk, b_pk = _init_linear(keys[3], KG_DIM, H, xavier=True)
    W_mnu, b_mnu = _init_linear(keys[4], 3 * H, H)
    W_mni, b_mni = _init_linear(keys[5], 3 * H, H)
    mlp0 = _init_mlp(keys[6], H, 3 * H, 3 * H)
    mlp1 = _init_mlp(keys[7], H, 3 * H, 3 * H)
    mlp2 = _init_mlp(keys[8], H, 3 * H, 3 * H)
    mlp3 = _init_mlp(keys[9], H, 3 * H, 3 * H)
    W_p1, b_p1 = _init_linear(keys[10], 2 * H, H)
    W_p2, b_p2 = _init_linear(keys[11], H, 1)

    # --- w64 slab: projections (+bias rows), meta-nets, pred Linear1, pred misc ---
    w64 = jnp.zeros((W64_ROWS, 2 * H), jnp.float32)
    w64 = w64.at[0:ATTR_DIM, 0:H].set(W_da)
    w64 = w64.at[ATTR_DIM:FEAT_W, H:2 * H].set(W_dk)
    w64 = w64.at[FEAT_W:FEAT_W + ATTR_DIM, 0:H].set(W_pa)
    w64 = w64.at[FEAT_W + ATTR_DIM:2 * FEAT_W, H:2 * H].set(W_pk)
    w64 = w64.at[DRUG_ONE_COL, 0:H].set(b_da).at[DRUG_ONE_COL, H:2 * H].set(b_dk)
    w64 = w64.at[PROT_ONE_COL, 0:H].set(b_pa).at[PROT_ONE_COL, H:2 * H].set(b_pk)
    w64 = w64.at[OFF_WMN:OFF_WMN + 3 * H, 0:H].set(W_mnu)
    w64 = w64.at[OFF_WMN:OFF_WMN + 3 * H, H:2 * H].set(W_mni)
    w64 = w64.at[OFF_BMN, 0:H].set(b_mnu).at[OFF_BMN, H:2 * H].set(b_mni)
    w64 = w64.at[OFF_WP1:OFF_WP1 + 2 * H, 0:H].set(W_p1)
    w64 = w64.at[OFF_TAIL, 0:H].set(b_p1).at[OFF_TAIL, H:2 * H].set(W_p2[:, 0])
    w64 = w64.at[OFF_TAIL + 1, 0].set(b_p2[0])

    # --- w384 slab: cross-type block-diagonal fused MLPs ---
    wpre_u, bpre_u, wout_u, bout_u = _fuse_mlp_pair(mlp0, mlp1)
    wpre_i, bpre_i, wout_i, bout_i = _fuse_mlp_pair(mlp2, mlp3)
    w384 = jnp.zeros((W384_ROWS, 12 * H), jnp.float32)
    w384 = w384.at[OFF_WPRE:OFF_WPRE + H, 0:6 * H].set(wpre_u)
    w384 = w384.at[OFF_WPRE + H:OFF_WPRE + 2 * H, 6 * H:12 * H].set(wpre_i)
    w384 = w384.at[OFF_BPRE, 0:6 * H].set(bpre_u).at[OFF_BPRE, 6 * H:12 * H].set(bpre_i)
    w384 = w384.at[OFF_WOUT:OFF_WOUT + 6 * H, 0:6 * H].set(wout_u)
    w384 = w384.at[OFF_WOUT + 6 * H:OFF_WOUT + 12 * H, 6 * H:12 * H].set(wout_i)
    w384 = w384.at[OFF_BOUT, 0:6 * H].set(bout_u).at[OFF_BOUT, 6 * H:12 * H].set(bout_i)
    return {"w64": w64, "w384": w384}


def make_data(key):
    ND, NP = NUM_DRUGS, NUM_PROTEINS
    N = ND + NP
    keys = jax.random.split(key, 5)
    drug_attr = jax.random.normal(keys[0], (ND, ATTR_DIM), jnp.float32)
    protein_attr = jax.random.normal(keys[1], (NP, ATTR_DIM), jnp.float32)
    drug_kg = jax.random.normal(keys[2], (ND, KG_DIM), jnp.float32)
    protein_kg = jax.random.normal(keys[3], (NP, KG_DIM), jnp.float32)
    dti = jax.random.bernoulli(keys[4], 0.5, (ND, NP)).astype(jnp.float32)
    dti = dti.at[jnp.arange(ND), jnp.arange(ND) % NP].set(1.0)    # no isolated nodes

    # LGConv's gcn_norm (no self-loops) on the bipartite graph, as one (N,N) block matrix
    deg_d = jnp.sum(dti, axis=1)
    deg_p = jnp.sum(dti, axis=0)
    dinv_d = jnp.where(deg_d > 0, deg_d ** -0.5, 0.0)
    dinv_p = jnp.where(deg_p > 0, deg_p ** -0.5, 0.0)
    adj_dp = dinv_d[:, None] * dti * dinv_p[None, :]
    adj = jnp.zeros((N, N), jnp.float32)
    adj = adj.at[:ND, ND:].set(adj_dp).at[ND:, :ND].set(adj_dp.T)
    badj = jnp.zeros((N, N), jnp.float32)
    badj = badj.at[:ND, ND:].set(dti).at[ND:, :ND].set(dti.T)
    graph = jnp.concatenate([adj, badj], axis=1)                  # (N, 2N)

    # column-blocked feature slab with bias-indicator columns
    feat = jnp.zeros((N, FEAT_COLS), jnp.float32)
    feat = feat.at[:ND, 0:ATTR_DIM].set(drug_attr)
    feat = feat.at[:ND, ATTR_DIM:FEAT_W].set(drug_kg)
    feat = feat.at[ND:, FEAT_W:FEAT_W + ATTR_DIM].set(protein_attr)
    feat = feat.at[ND:, FEAT_W + ATTR_DIM:2 * FEAT_W].set(protein_kg)
    feat = feat.at[:ND, DRUG_ONE_COL].set(1.0)
    feat = feat.at[ND:, PROT_ONE_COL].set(1.0)
    return {"feat": feat, "graph": graph}


if __name__ == "__main__":
    root = jax.random.PRNGKey(0)
    k_param, k_data, k_samp, k_lab = jax.random.split(root, 4)

    params = make_params(k_param)
    data = make_data(k_data)
    samples = jnp.stack(
        [
            jax.random.randint(k_samp, (BATCH,), 0, NUM_DRUGS),
            jax.random.randint(jax.random.fold_in(k_samp, 1), (BATCH,), 0, NUM_PROTEINS),
        ],
        axis=1,
    ).astype(jnp.int32)
    labels = jax.random.bernoulli(k_lab, 0.5, (BATCH,)).astype(jnp.float32)

    fwd = jax.jit(model_forward)
    out, loss = fwd(params["w64"], params["w384"], data["feat"], data["graph"], samples, labels)
    jax.block_until_ready((out, loss))
    assert out.shape == (BATCH,) and loss.shape == ()
    assert bool(jnp.all(jnp.isfinite(out))) and bool(jnp.isfinite(loss))
    print("KERNEL_OK")
</pallas_src>

<mosaic_0001>
module attributes {stable_mosaic.version = 11 : i64} {
  func.func @_fused_forward_kernel(%arg0: i32, %arg1: memref<16x536xf32, #tpu.memory_space<vmem>>, %arg2: memref<16x32xf32, #tpu.memory_space<vmem>>, %arg3: memref<8x2xi32, #tpu.memory_space<vmem>>, %arg4: memref<8x1xf32, #tpu.memory_space<vmem>>, %arg5: memref<712x64xf32, #tpu.memory_space<vmem>>, %arg6: memref<464x384xf32, #tpu.memory_space<vmem>>, %arg7: memref<1x128xf32, #tpu.memory_space<vmem>>) attributes {dimension_semantics = [#tpu.dimension_semantics<arbitrary>], iteration_bounds = array<i64: 1>, scalar_prefetch = 0 : i64, scratch_operands = 0 : i64, tpu.core_type = #tpu.core_type<tc>, window_params = [{pipeline_mode = #tpu.pipeline_mode<synchronous>, transform_indices = @transform_0, window_bounds = array<i64: 16, 536>}, {pipeline_mode = #tpu.pipeline_mode<synchronous>, transform_indices = @transform_1, window_bounds = array<i64: 16, 32>}, {pipeline_mode = #tpu.pipeline_mode<synchronous>, transform_indices = @transform_2, window_bounds = array<i64: 8, 2>}, {pipeline_mode = #tpu.pipeline_mode<synchronous>, transform_indices = @transform_3, window_bounds = array<i64: 8, 1>}, {pipeline_mode = #tpu.pipeline_mode<synchronous>, transform_indices = @transform_4, window_bounds = array<i64: 712, 64>}, {pipeline_mode = #tpu.pipeline_mode<synchronous>, transform_indices = @transform_5, window_bounds = array<i64: 464, 384>}, {pipeline_mode = #tpu.pipeline_mode<synchronous>, transform_indices = @transform_6, window_bounds = array<i64: 1, 128>}]} {
    %c0 = arith.constant 0 : index
    %c0_0 = arith.constant 0 : index
    %0 = vector.load %arg1[%c0, %c0_0] : memref<16x536xf32, #tpu.memory_space<vmem>>, vector<16x536xf32>
    %c0_1 = arith.constant 0 : index
    %c0_2 = arith.constant 0 : index
    %1 = vector.load %arg5[%c0_1, %c0_2] : memref<712x64xf32, #tpu.memory_space<vmem>>, vector<536x64xf32>
    %cst = arith.constant dense<0.000000e+00> : vector<16x64xf32>
    %2 = tpu.matmul %0, %1, %cst {dimension_numbers = #tpu.dot_dimension_numbers<[1], [0], [0], [1], [0, 0, 1, 1], [], []>} : vector<16x536xf32>, vector<536x64xf32>, vector<16x64xf32> -> vector<16x64xf32>
    %3 = vector.extract_strided_slice %2 {offsets = [0, 0], sizes = [16, 32], strides = [1, 1]} : vector<16x64xf32> to vector<16x32xf32>
    %4 = vector.extract_strided_slice %2 {offsets = [0, 32], sizes = [16, 32], strides = [1, 1]} : vector<16x64xf32> to vector<16x32xf32>
    %c0_3 = arith.constant 0 : index
    %c0_4 = arith.constant 0 : index
    %5 = vector.load %arg2[%c0_3, %c0_4] : memref<16x32xf32, #tpu.memory_space<vmem>>, vector<16x16xf32>
    %cst_5 = arith.constant 2.000000e-01 : f32
    %6 = vector.broadcast %cst_5 : f32 to vector<16x32xf32>
    %7 = arith.mulf %3, %6 : vector<16x32xf32>
    %cst_6 = arith.constant dense<0.000000e+00> : vector<16x32xf32>
    %8 = tpu.matmul %5, %3, %cst_6 {dimension_numbers = #tpu.dot_dimension_numbers<[1], [0], [0], [1], [0, 0, 1, 1], [], []>} : vector<16x16xf32>, vector<16x32xf32>, vector<16x32xf32> -> vector<16x32xf32>
    %cst_7 = arith.constant 2.000000e-01 : f32
    %9 = vector.broadcast %cst_7 : f32 to vector<16x32xf32>
    %10 = arith.mulf %8, %9 : vector<16x32xf32>
    %11 = arith.addf %7, %10 : vector<16x32xf32>
    %cst_8 = arith.constant dense<0.000000e+00> : vector<16x32xf32>
    %12 = tpu.matmul %5, %8, %cst_8 {dimension_numbers = #tpu.dot_dimension_numbers<[1], [0], [0], [1], [0, 0, 1, 1], [], []>} : vector<16x16xf32>, vector<16x32xf32>, vector<16x32xf32> -> vector<16x32xf32>
    %cst_9 = arith.constant 2.000000e-01 : f32
    %13 = vector.broadcast %cst_9 : f32 to vector<16x32xf32>
    %14 = arith.mulf %12, %13 : vector<16x32xf32>
    %15 = arith.addf %11, %14 : vector<16x32xf32>
    %cst_10 = arith.constant dense<0.000000e+00> : vector<16x32xf32>
    %16 = tpu.matmul %5, %12, %cst_10 {dimension_numbers = #tpu.dot_dimension_numbers<[1], [0], [0], [1], [0, 0, 1, 1], [], []>} : vector<16x16xf32>, vector<16x32xf32>, vector<16x32xf32> -> vector<16x32xf32>
    %cst_11 = arith.constant 2.000000e-01 : f32
    %17 = vector.broadcast %cst_11 : f32 to vector<16x32xf32>
    %18 = arith.mulf %16, %17 : vector<16x32xf32>
    %19 = arith.addf %15, %18 : vector<16x32xf32>
    %cst_12 = arith.constant dense<0.000000e+00> : vector<16x32xf32>
    %20 = tpu.matmul %5, %16, %cst_12 {dimension_numbers = #tpu.dot_dimension_numbers<[1], [0], [0], [1], [0, 0, 1, 1], [], []>} : vector<16x16xf32>, vector<16x32xf32>, vector<16x32xf32> -> vector<16x32xf32>
    %cst_13 = arith.constant 2.000000e-01 : f32
    %21 = vector.broadcast %cst_13 : f32 to vector<16x32xf32>
    %22 = arith.mulf %20, %21 : vector<16x32xf32>
    %23 = arith.addf %19, %22 : vector<16x32xf32>
    %c0_14 = arith.constant 0 : index
    %c16 = arith.constant 16 : index
    %24 = vector.load %arg2[%c0_14, %c16] : memref<16x32xf32, #tpu.memory_space<vmem>>, vector<16x16xf32>
    %cst_15 = arith.constant dense<0.000000e+00> : vector<16x32xf32>
    %25 = tpu.matmul %24, %23, %cst_15 {dimension_numbers = #tpu.dot_dimension_numbers<[1], [0], [0], [1], [0, 0, 1, 1], [], []>} : vector<16x16xf32>, vector<16x32xf32>, vector<16x32xf32> -> vector<16x32xf32>
    %26 = tpu.concatenate %4, %23, %25 in 1 : vector<16x32xf32>, vector<16x32xf32>, vector<16x32xf32> -> vector<16x96xf32>
    %c536 = arith.constant 536 : index
    %c0_16 = arith.constant 0 : index
    %27 = vector.load %arg5[%c536, %c0_16] : memref<712x64xf32, #tpu.memory_space<vmem>>, vector<96x64xf32>
    %cst_17 = arith.constant dense<0.000000e+00> : vector<16x64xf32>
    %28 = tpu.matmul %26, %27, %cst_17 {dimension_numbers = #tpu.dot_dimension_numbers<[1], [0], [0], [1], [0, 0, 1, 1], [], []>} : vector<16x96xf32>, vector<96x64xf32>, vector<16x64xf32> -> vector<16x64xf32>
    %c632 = arith.constant 632 : index
    %c0_18 = arith.constant 0 : index
    %29 = vector.load %arg5[%c632, %c0_18] : memref<712x64xf32, #tpu.memory_space<vmem>>, vector<8x64xf32>
    %30 = vector.extract_strided_slice %29 {offsets = [0, 0], sizes = [1, 64], strides = [1, 1]} : vector<8x64xf32> to vector<1x64xf32>
    %31 = vector.broadcast %30 : vector<1x64xf32> to vector<16x64xf32>
    %32 = arith.addf %28, %31 : vector<16x64xf32>
    %c0_19 = arith.constant 0 : index
    %c0_20 = arith.constant 0 : index
    %33 = vector.load %arg6[%c0_19, %c0_20] : memref<464x384xf32, #tpu.memory_space<vmem>>, vector<64x384xf32>
    %cst_21 = arith.constant dense<0.000000e+00> : vector<16x384xf32>
    %34 = tpu.matmul %32, %33, %cst_21 {dimension_numbers = #tpu.dot_dimension_numbers<[1], [0], [0], [1], [0, 0, 1, 1], [], []>} : vector<16x64xf32>, vector<64x384xf32>, vector<16x384xf32> -> vector<16x384xf32>
    %c64 = arith.constant 64 : index
    %c0_22 = arith.constant 0 : index
    %35 = vector.load %arg6[%c64, %c0_22] : memref<464x384xf32, #tpu.memory_space<vmem>>, vector<8x384xf32>
    %36 = vector.extract_strided_slice %35 {offsets = [0, 0], sizes = [1, 384], strides = [1, 1]} : vector<8x384xf32> to vector<1x384xf32>
    %37 = vector.broadcast %36 : vector<1x384xf32> to vector<16x384xf32>
    %38 = arith.addf %34, %37 : vector<16x384xf32>
    %cst_23 = arith.constant 0.000000e+00 : f32
    %39 = vector.broadcast %cst_23 : f32 to vector<16x384xf32>
    %40 = arith.cmpf ogt, %38, %39 : vector<16x384xf32>
    %cst_24 = arith.constant 2.500000e-01 : f32
    %41 = vector.broadcast %cst_24 : f32 to vector<16x384xf32>
    %42 = arith.mulf %41, %38 : vector<16x384xf32>
    %43 = arith.select %40, %38, %42 : vector<16x384xi1>, vector<16x384xf32>
    %c72 = arith.constant 72 : index
    %c0_25 = arith.constant 0 : index
    %44 = vector.load %arg6[%c72, %c0_25] : memref<464x384xf32, #tpu.memory_space<vmem>>, vector<384x384xf32>
    %cst_26 = arith.constant dense<0.000000e+00> : vector<16x384xf32>
    %45 = tpu.matmul %43, %44, %cst_26 {dimension_numbers = #tpu.dot_dimension_numbers<[1], [0], [0], [1], [0, 0, 1, 1], [], []>} : vector<16x384xf32>, vector<384x384xf32>, vector<16x384xf32> -> vector<16x384xf32>
    %c456 = arith.constant 456 : index
    %c0_27 = arith.constant 0 : index
    %46 = vector.load %arg6[%c456, %c0_27] : memref<464x384xf32, #tpu.memory_space<vmem>>, vector<8x384xf32>
    %47 = vector.extract_strided_slice %46 {offsets = [0, 0], sizes = [1, 384], strides = [1, 1]} : vector<8x384xf32> to vector<1x384xf32>
    %48 = vector.broadcast %47 : vector<1x384xf32> to vector<16x384xf32>
    %49 = arith.addf %45, %48 : vector<16x384xf32>
    %50 = vector.extract_strided_slice %4 {offsets = [0, 0], sizes = [8, 32], strides = [1, 1]} : vector<16x32xf32> to vector<8x32xf32>
    %51 = vector.extract_strided_slice %4 {offsets = [8, 0], sizes = [8, 32], strides = [1, 1]} : vector<16x32xf32> to vector<8x32xf32>
    %52 = vector.extract_strided_slice %49 {offsets = [0, 0], sizes = [8, 192], strides = [1, 1]} : vector<16x384xf32> to vector<8x192xf32>
    %53 = vector.extract_strided_slice %52 {offsets = [0, 0], sizes = [8, 32], strides = [1, 1]} : vector<8x192xf32> to vector<8x32xf32>
    %54 = vector.extract_strided_slice %52 {offsets = [0, 32], sizes = [8, 32], strides = [1, 1]} : vector<8x192xf32> to vector<8x32xf32>
    %55 = vector.extract_strided_slice %52 {offsets = [0, 64], sizes = [8, 32], strides = [1, 1]} : vector<8x192xf32> to vector<8x32xf32>
    %56 = vector.extract_strided_slice %52 {offsets = [0, 96], sizes = [8, 32], strides = [1, 1]} : vector<8x192xf32> to vector<8x32xf32>
    %57 = vector.extract_strided_slice %52 {offsets = [0, 128], sizes = [8, 32], strides = [1, 1]} : vector<8x192xf32> to vector<8x32xf32>
    %58 = vector.extract_strided_slice %52 {offsets = [0, 160], sizes = [8, 32], strides = [1, 1]} : vector<8x192xf32> to vector<8x32xf32>
    %59 = arith.mulf %53, %53 : vector<8x32xf32>
    %60 = arith.mulf %54, %54 : vector<8x32xf32>
    %61 = arith.addf %59, %60 : vector<8x32xf32>
    %62 = arith.mulf %55, %55 : vector<8x32xf32>
    %63 = arith.addf %61, %62 : vector<8x32xf32>
    %cst_28 = arith.constant dense<0.000000e+00> : vector<8xf32>
    %64 = vector.multi_reduction <add>, %63, %cst_28 [1] : vector<8x32xf32> to vector<8xf32>
    %65 = vector.shape_cast %64 : vector<8xf32> to vector<8x1xf32>
    %66 = arith.mulf %56, %56 : vector<8x32xf32>
    %67 = arith.mulf %57, %57 : vector<8x32xf32>
    %68 = arith.addf %66, %67 : vector<8x32xf32>
    %69 = arith.mulf %58, %58 : vector<8x32xf32>
    %70 = arith.addf %68, %69 : vector<8x32xf32>
    %cst_29 = arith.constant dense<0.000000e+00> : vector<8xf32>
    %71 = vector.multi_reduction <add>, %70, %cst_29 [1] : vector<8x32xf32> to vector<8xf32>
    %72 = vector.shape_cast %71 : vector<8xf32> to vector<8x1xf32>
    %cst_30 = arith.constant 1.000000e-24 : f32
    %73 = vector.broadcast %cst_30 : f32 to vector<8x1xf32>
    %74 = arith.maximumf %65, %73 : vector<8x1xf32>
    %75 = math.rsqrt %74 : vector<8x1xf32>
    %cst_31 = arith.constant 1.000000e-24 : f32
    %76 = vector.broadcast %cst_31 : f32 to vector<8x1xf32>
    %77 = arith.maximumf %72, %76 : vector<8x1xf32>
    %78 = math.rsqrt %77 : vector<8x1xf32>
    %79 = vector.broadcast %75 : vector<8x1xf32> to vector<8x32xf32>
    %80 = arith.mulf %53, %79 : vector<8x32xf32>
    %81 = vector.broadcast %75 : vector<8x1xf32> to vector<8x32xf32>
    %82 = arith.mulf %54, %81 : vector<8x32xf32>
    %83 = vector.broadcast %75 : vector<8x1xf32> to vector<8x32xf32>
    %84 = arith.mulf %55, %83 : vector<8x32xf32>
    %85 = vector.broadcast %78 : vector<8x1xf32> to vector<8x32xf32>
    %86 = arith.mulf %56, %85 : vector<8x32xf32>
    %87 = vector.broadcast %78 : vector<8x1xf32> to vector<8x32xf32>
    %88 = arith.mulf %57, %87 : vector<8x32xf32>
    %89 = vector.broadcast %78 : vector<8x1xf32> to vector<8x32xf32>
    %90 = arith.mulf %58, %89 : vector<8x32xf32>
    %cst_32 = arith.constant dense<0.000000e+00> : vector<32xf32>
    %91 = vector.multi_reduction <add>, %80, %cst_32 [0] : vector<8x32xf32> to vector<32xf32>
    %92 = vector.shape_cast %91 : vector<32xf32> to vector<1x32xf32>
    %cst_33 = arith.constant 8.000000e+00 : f32
    %93 = vector.broadcast %cst_33 : f32 to vector<1x32xf32>
    %94 = arith.divf %92, %93 : vector<1x32xf32>
    %95 = vector.broadcast %94 : vector<1x32xf32> to vector<8x32xf32>
    %96 = arith.addf %80, %95 : vector<8x32xf32>
    %cst_34 = arith.constant dense<0xFF800000> : vector<8xf32>
    %97 = vector.multi_reduction <maximumf>, %96, %cst_34 [1] : vector<8x32xf32> to vector<8xf32>
    %98 = vector.shape_cast %97 : vector<8xf32> to vector<8x1xf32>
    %99 = vector.broadcast %98 : vector<8x1xf32> to vector<8x32xf32>
    %100 = arith.subf %96, %99 : vector<8x32xf32>
    %101 = math.exp %100 : vector<8x32xf32>
    %cst_35 = arith.constant dense<0.000000e+00> : vector<8xf32>
    %102 = vector.multi_reduction <add>, %101, %cst_35 [1] : vector<8x32xf32> to vector<8xf32>
    %103 = vector.shape_cast %102 : vector<8xf32> to vector<8x1xf32>
    %104 = vector.broadcast %103 : vector<8x1xf32> to vector<8x32xf32>
    %105 = arith.divf %101, %104 : vector<8x32xf32>
    %106 = arith.mulf %50, %105 : vector<8x32xf32>
    %cst_36 = arith.constant dense<0.000000e+00> : vector<8xf32>
    %107 = vector.multi_reduction <add>, %106, %cst_36 [1] : vector<8x32xf32> to vector<8xf32>
    %108 = vector.shape_cast %107 : vector<8xf32> to vector<8x1xf32>
    %cst_37 = arith.constant dense<0.000000e+00> : vector<32xf32>
    %109 = vector.multi_reduction <add>, %82, %cst_37 [0] : vector<8x32xf32> to vector<32xf32>
    %110 = vector.shape_cast %109 : vector<32xf32> to vector<1x32xf32>
    %cst_38 = arith.constant 8.000000e+00 : f32
    %111 = vector.broadcast %cst_38 : f32 to vector<1x32xf32>
    %112 = arith.divf %110, %111 : vector<1x32xf32>
    %113 = vector.broadcast %112 : vector<1x32xf32> to vector<8x32xf32>
    %114 = arith.addf %82, %113 : vector<8x32xf32>
    %cst_39 = arith.constant dense<0xFF800000> : vector<8xf32>
    %115 = vector.multi_reduction <maximumf>, %114, %cst_39 [1] : vector<8x32xf32> to vector<8xf32>
    %116 = vector.shape_cast %115 : vector<8xf32> to vector<8x1xf32>
    %117 = vector.broadcast %116 : vector<8x1xf32> to vector<8x32xf32>
    %118 = arith.subf %114, %117 : vector<8x32xf32>
    %119 = math.exp %118 : vector<8x32xf32>
    %cst_40 = arith.constant dense<0.000000e+00> : vector<8xf32>
    %120 = vector.multi_reduction <add>, %119, %cst_40 [1] : vector<8x32xf32> to vector<8xf32>
    %121 = vector.shape_cast %120 : vector<8xf32> to vector<8x1xf32>
    %122 = vector.broadcast %121 : vector<8x1xf32> to vector<8x32xf32>
    %123 = arith.divf %119, %122 : vector<8x32xf32>
    %124 = arith.mulf %50, %123 : vector<8x32xf32>
    %cst_41 = arith.constant dense<0.000000e+00> : vector<8xf32>
    %125 = vector.multi_reduction <add>, %124, %cst_41 [1] : vector<8x32xf32> to vector<8xf32>
    %126 = vector.shape_cast %125 : vector<8xf32> to vector<8x1xf32>
    %cst_42 = arith.constant dense<0.000000e+00> : vector<32xf32>
    %127 = vector.multi_reduction <add>, %84, %cst_42 [0] : vector<8x32xf32> to vector<32xf32>
    %128 = vector.shape_cast %127 : vector<32xf32> to vector<1x32xf32>
    %cst_43 = arith.constant 8.000000e+00 : f32
    %129 = vector.broadcast %cst_43 : f32 to vector<1x32xf32>
    %130 = arith.divf %128, %129 : vector<1x32xf32>
    %131 = vector.broadcast %130 : vector<1x32xf32> to vector<8x32xf32>
    %132 = arith.addf %84, %131 : vector<8x32xf32>
    %cst_44 = arith.constant dense<0xFF800000> : vector<8xf32>
    %133 = vector.multi_reduction <maximumf>, %132, %cst_44 [1] : vector<8x32xf32> to vector<8xf32>
    %134 = vector.shape_cast %133 : vector<8xf32> to vector<8x1xf32>
    %135 = vector.broadcast %134 : vector<8x1xf32> to vector<8x32xf32>
    %136 = arith.subf %132, %135 : vector<8x32xf32>
    %137 = math.exp %136 : vector<8x32xf32>
    %cst_45 = arith.constant dense<0.000000e+00> : vector<8xf32>
    %138 = vector.multi_reduction <add>, %137, %cst_45 [1] : vector<8x32xf32> to vector<8xf32>
    %139 = vector.shape_cast %138 : vector<8xf32> to vector<8x1xf32>
    %140 = vector.broadcast %139 : vector<8x1xf32> to vector<8x32xf32>
    %141 = arith.divf %137, %140 : vector<8x32xf32>
    %142 = arith.mulf %50, %141 : vector<8x32xf32>
    %cst_46 = arith.constant dense<0.000000e+00> : vector<8xf32>
    %143 = vector.multi_reduction <add>, %142, %cst_46 [1] : vector<8x32xf32> to vector<8xf32>
    %144 = vector.shape_cast %143 : vector<8xf32> to vector<8x1xf32>
    %cst_47 = arith.constant dense<0.000000e+00> : vector<32xf32>
    %145 = vector.multi_reduction <add>, %86, %cst_47 [0] : vector<8x32xf32> to vector<32xf32>
    %146 = vector.shape_cast %145 : vector<32xf32> to vector<1x32xf32>
    %cst_48 = arith.constant 8.000000e+00 : f32
    %147 = vector.broadcast %cst_48 : f32 to vector<1x32xf32>
    %148 = arith.divf %146, %147 : vector<1x32xf32>
    %149 = vector.broadcast %148 : vector<1x32xf32> to vector<8x32xf32>
    %150 = arith.addf %86, %149 : vector<8x32xf32>
    %cst_49 = arith.constant dense<0.000000e+00> : vector<32xf32>
    %151 = vector.multi_reduction <add>, %88, %cst_49 [0] : vector<8x32xf32> to vector<32xf32>
    %152 = vector.shape_cast %151 : vector<32xf32> to vector<1x32xf32>
    %cst_50 = arith.constant 8.000000e+00 : f32
    %153 = vector.broadcast %cst_50 : f32 to vector<1x32xf32>
    %154 = arith.divf %152, %153 : vector<1x32xf32>
    %155 = vector.broadcast %154 : vector<1x32xf32> to vector<8x32xf32>
    %156 = arith.addf %88, %155 : vector<8x32xf32>
    %cst_51 = arith.constant dense<0.000000e+00> : vector<32xf32>
    %157 = vector.multi_reduction <add>, %90, %cst_51 [0] : vector<8x32xf32> to vector<32xf32>
    %158 = vector.shape_cast %157 : vector<32xf32> to vector<1x32xf32>
    %cst_52 = arith.constant 8.000000e+00 : f32
    %159 = vector.broadcast %cst_52 : f32 to vector<1x32xf32>
    %160 = arith.divf %158, %159 : vector<1x32xf32>
    %161 = vector.broadcast %160 : vector<1x32xf32> to vector<8x32xf32>
    %162 = arith.addf %90, %161 : vector<8x32xf32>
    %163 = arith.maximumf %150, %156 : vector<8x32xf32>
    %164 = arith.maximumf %163, %162 : vector<8x32xf32>
    %165 = arith.subf %150, %164 : vector<8x32xf32>
    %166 = math.exp %165 : vector<8x32xf32>
    %167 = arith.subf %156, %164 : vector<8x32xf32>
    %168 = math.exp %167 : vector<8x32xf32>
    %169 = arith.subf %162, %164 : vector<8x32xf32>
    %170 = math.exp %169 : vector<8x32xf32>
    %171 = vector.broadcast %108 : vector<8x1xf32> to vector<8x32xf32>
    %172 = arith.mulf %171, %166 : vector<8x32xf32>
    %173 = vector.broadcast %126 : vector<8x1xf32> to vector<8x32xf32>
    %174 = arith.mulf %173, %168 : vector<8x32xf32>
    %175 = arith.addf %172, %174 : vector<8x32xf32>
    %176 = vector.broadcast %144 : vector<8x1xf32> to vector<8x32xf32>
    %177 = arith.mulf %176, %170 : vector<8x32xf32>
    %178 = arith.addf %175, %177 : vector<8x32xf32>
    %179 = arith.addf %166, %168 : vector<8x32xf32>
    %180 = arith.addf %179, %170 : vector<8x32xf32>
    %181 = arith.divf %178, %180 : vector<8x32xf32>
    %182 = vector.extract_strided_slice %49 {offsets = [8, 192], sizes = [8, 192], strides = [1, 1]} : vector<16x384xf32> to vector<8x192xf32>
    %183 = vector.extract_strided_slice %182 {offsets = [0, 0], sizes = [8, 32], strides = [1, 1]} : vector<8x192xf32> to vector<8x32xf32>
    %184 = vector.extract_strided_slice %182 {offsets = [0, 32], sizes = [8, 32], strides = [1, 1]} : vector<8x192xf32> to vector<8x32xf32>
    %185 = vector.extract_strided_slice %182 {offsets = [0, 64], sizes = [8, 32], strides = [1, 1]} : vector<8x192xf32> to vector<8x32xf32>
    %186 = vector.extract_strided_slice %182 {offsets = [0, 96], sizes = [8, 32], strides = [1, 1]} : vector<8x192xf32> to vector<8x32xf32>
    %187 = vector.extract_strided_slice %182 {offsets = [0, 128], sizes = [8, 32], strides = [1, 1]} : vector<8x192xf32> to vector<8x32xf32>
    %188 = vector.extract_strided_slice %182 {offsets = [0, 160], sizes = [8, 32], strides = [1, 1]} : vector<8x192xf32> to vector<8x32xf32>
    %189 = arith.mulf %183, %183 : vector<8x32xf32>
    %190 = arith.mulf %184, %184 : vector<8x32xf32>
    %191 = arith.addf %189, %190 : vector<8x32xf32>
    %192 = arith.mulf %185, %185 : vector<8x32xf32>
    %193 = arith.addf %191, %192 : vector<8x32xf32>
    %cst_53 = arith.constant dense<0.000000e+00> : vector<8xf32>
    %194 = vector.multi_reduction <add>, %193, %cst_53 [1] : vector<8x32xf32> to vector<8xf32>
    %195 = vector.shape_cast %194 : vector<8xf32> to vector<8x1xf32>
    %196 = arith.mulf %186, %186 : vector<8x32xf32>
    %197 = arith.mulf %187, %187 : vector<8x32xf32>
    %198 = arith.addf %196, %197 : vector<8x32xf32>
    %199 = arith.mulf %188, %188 : vector<8x32xf32>
    %200 = arith.addf %198, %199 : vector<8x32xf32>
    %cst_54 = arith.constant dense<0.000000e+00> : vector<8xf32>
    %201 = vector.multi_reduction <add>, %200, %cst_54 [1] : vector<8x32xf32> to vector<8xf32>
    %202 = vector.shape_cast %201 : vector<8xf32> to vector<8x1xf32>
    %cst_55 = arith.constant 1.000000e-24 : f32
    %203 = vector.broadcast %cst_55 : f32 to vector<8x1xf32>
    %204 = arith.maximumf %195, %203 : vector<8x1xf32>
    %205 = math.rsqrt %204 : vector<8x1xf32>
    %cst_56 = arith.constant 1.000000e-24 : f32
    %206 = vector.broadcast %cst_56 : f32 to vector<8x1xf32>
    %207 = arith.maximumf %202, %206 : vector<8x1xf32>
    %208 = math.rsqrt %207 : vector<8x1xf32>
    %209 = vector.broadcast %205 : vector<8x1xf32> to vector<8x32xf32>
    %210 = arith.mulf %183, %209 : vector<8x32xf32>
    %211 = vector.broadcast %205 : vector<8x1xf32> to vector<8x32xf32>
    %212 = arith.mulf %184, %211 : vector<8x32xf32>
    %213 = vector.broadcast %205 : vector<8x1xf32> to vector<8x32xf32>
    %214 = arith.mulf %185, %213 : vector<8x32xf32>
    %215 = vector.broadcast %208 : vector<8x1xf32> to vector<8x32xf32>
    %216 = arith.mulf %186, %215 : vector<8x32xf32>
    %217 = vector.broadcast %208 : vector<8x1xf32> to vector<8x32xf32>
    %218 = arith.mulf %187, %217 : vector<8x32xf32>
    %219 = vector.broadcast %208 : vector<8x1xf32> to vector<8x32xf32>
    %220 = arith.mulf %188, %219 : vector<8x32xf32>
    %cst_57 = arith.constant dense<0.000000e+00> : vector<32xf32>
    %221 = vector.multi_reduction <add>, %210, %cst_57 [0] : vector<8x32xf32> to vector<32xf32>
    %222 = vector.shape_cast %221 : vector<32xf32> to vector<1x32xf32>
    %cst_58 = arith.constant 8.000000e+00 : f32
    %223 = vector.broadcast %cst_58 : f32 to vector<1x32xf32>
    %224 = arith.divf %222, %223 : vector<1x32xf32>
    %225 = vector.broadcast %224 : vector<1x32xf32> to vector<8x32xf32>
    %226 = arith.addf %210, %225 : vector<8x32xf32>
    %cst_59 = arith.constant dense<0xFF800000> : vector<8xf32>
    %227 = vector.multi_reduction <maximumf>, %226, %cst_59 [1] : vector<8x32xf32> to vector<8xf32>
    %228 = vector.shape_cast %227 : vector<8xf32> to vector<8x1xf32>
    %229 = vector.broadcast %228 : vector<8x1xf32> to vector<8x32xf32>
    %230 = arith.subf %226, %229 : vector<8x32xf32>
    %231 = math.exp %230 : vector<8x32xf32>
    %cst_60 = arith.constant dense<0.000000e+00> : vector<8xf32>
    %232 = vector.multi_reduction <add>, %231, %cst_60 [1] : vector<8x32xf32> to vector<8xf32>
    %233 = vector.shape_cast %232 : vector<8xf32> to vector<8x1xf32>
    %234 = vector.broadcast %233 : vector<8x1xf32> to vector<8x32xf32>
    %235 = arith.divf %231, %234 : vector<8x32xf32>
    %236 = arith.mulf %51, %235 : vector<8x32xf32>
    %cst_61 = arith.constant dense<0.000000e+00> : vector<8xf32>
    %237 = vector.multi_reduction <add>, %236, %cst_61 [1] : vector<8x32xf32> to vector<8xf32>
    %238 = vector.shape_cast %237 : vector<8xf32> to vector<8x1xf32>
    %cst_62 = arith.constant dense<0.000000e+00> : vector<32xf32>
    %239 = vector.multi_reduction <add>, %212, %cst_62 [0] : vector<8x32xf32> to vector<32xf32>
    %240 = vector.shape_cast %239 : vector<32xf32> to vector<1x32xf32>
    %cst_63 = arith.constant 8.000000e+00 : f32
    %241 = vector.broadcast %cst_63 : f32 to vector<1x32xf32>
    %242 = arith.divf %240, %241 : vector<1x32xf32>
    %243 = vector.broadcast %242 : vector<1x32xf32> to vector<8x32xf32>
    %244 = arith.addf %212, %243 : vector<8x32xf32>
    %cst_64 = arith.constant dense<0xFF800000> : vector<8xf32>
    %245 = vector.multi_reduction <maximumf>, %244, %cst_64 [1] : vector<8x32xf32> to vector<8xf32>
    %246 = vector.shape_cast %245 : vector<8xf32> to vector<8x1xf32>
    %247 = vector.broadcast %246 : vector<8x1xf32> to vector<8x32xf32>
    %248 = arith.subf %244, %247 : vector<8x32xf32>
    %249 = math.exp %248 : vector<8x32xf32>
    %cst_65 = arith.constant dense<0.000000e+00> : vector<8xf32>
    %250 = vector.multi_reduction <add>, %249, %cst_65 [1] : vector<8x32xf32> to vector<8xf32>
    %251 = vector.shape_cast %250 : vector<8xf32> to vector<8x1xf32>
    %252 = vector.broadcast %251 : vector<8x1xf32> to vector<8x32xf32>
    %253 = arith.divf %249, %252 : vector<8x32xf32>
    %254 = arith.mulf %51, %253 : vector<8x32xf32>
    %cst_66 = arith.constant dense<0.000000e+00> : vector<8xf32>
    %255 = vector.multi_reduction <add>, %254, %cst_66 [1] : vector<8x32xf32> to vector<8xf32>
    %256 = vector.shape_cast %255 : vector<8xf32> to vector<8x1xf32>
    %cst_67 = arith.constant dense<0.000000e+00> : vector<32xf32>
    %257 = vector.multi_reduction <add>, %214, %cst_67 [0] : vector<8x32xf32> to vector<32xf32>
    %258 = vector.shape_cast %257 : vector<32xf32> to vector<1x32xf32>
    %cst_68 = arith.constant 8.000000e+00 : f32
    %259 = vector.broadcast %cst_68 : f32 to vector<1x32xf32>
    %260 = arith.divf %258, %259 : vector<1x32xf32>
    %261 = vector.broadcast %260 : vector<1x32xf32> to vector<8x32xf32>
    %262 = arith.addf %214, %261 : vector<8x32xf32>
    %cst_69 = arith.constant dense<0xFF800000> : vector<8xf32>
    %263 = vector.multi_reduction <maximumf>, %262, %cst_69 [1] : vector<8x32xf32> to vector<8xf32>
    %264 = vector.shape_cast %263 : vector<8xf32> to vector<8x1xf32>
    %265 = vector.broadcast %264 : vector<8x1xf32> to vector<8x32xf32>
    %266 = arith.subf %262, %265 : vector<8x32xf32>
    %267 = math.exp %266 : vector<8x32xf32>
    %cst_70 = arith.constant dense<0.000000e+00> : vector<8xf32>
    %268 = vector.multi_reduction <add>, %267, %cst_70 [1] : vector<8x32xf32> to vector<8xf32>
    %269 = vector.shape_cast %268 : vector<8xf32> to vector<8x1xf32>
    %270 = vector.broadcast %269 : vector<8x1xf32> to vector<8x32xf32>
    %271 = arith.divf %267, %270 : vector<8x32xf32>
    %272 = arith.mulf %51, %271 : vector<8x32xf32>
    %cst_71 = arith.constant dense<0.000000e+00> : vector<8xf32>
    %273 = vector.multi_reduction <add>, %272, %cst_71 [1] : vector<8x32xf32> to vector<8xf32>
    %274 = vector.shape_cast %273 : vector<8xf32> to vector<8x1xf32>
    %cst_72 = arith.constant dense<0.000000e+00> : vector<32xf32>
    %275 = vector.multi_reduction <add>, %216, %cst_72 [0] : vector<8x32xf32> to vector<32xf32>
    %276 = vector.shape_cast %275 : vector<32xf32> to vector<1x32xf32>
    %cst_73 = arith.constant 8.000000e+00 : f32
    %277 = vector.broadcast %cst_73 : f32 to vector<1x32xf32>
    %278 = arith.divf %276, %277 : vector<1x32xf32>
    %279 = vector.broadcast %278 : vector<1x32xf32> to vector<8x32xf32>
    %280 = arith.addf %216, %279 : vector<8x32xf32>
    %cst_74 = arith.constant dense<0.000000e+00> : vector<32xf32>
    %281 = vector.multi_reduction <add>, %218, %cst_74 [0] : vector<8x32xf32> to vector<32xf32>
    %282 = vector.shape_cast %281 : vector<32xf32> to vector<1x32xf32>
    %cst_75 = arith.constant 8.000000e+00 : f32
    %283 = vector.broadcast %cst_75 : f32 to vector<1x32xf32>
    %284 = arith.divf %282, %283 : vector<1x32xf32>
    %285 = vector.broadcast %284 : vector<1x32xf32> to vector<8x32xf32>
    %286 = arith.addf %218, %285 : vector<8x32xf32>
    %cst_76 = arith.constant dense<0.000000e+00> : vector<32xf32>
    %287 = vector.multi_reduction <add>, %220, %cst_76 [0] : vector<8x32xf32> to vector<32xf32>
    %288 = vector.shape_cast %287 : vector<32xf32> to vector<1x32xf32>
    %cst_77 = arith.constant 8.000000e+00 : f32
    %289 = vector.broadcast %cst_77 : f32 to vector<1x32xf32>
    %290 = arith.divf %288, %289 : vector<1x32xf32>
    %291 = vector.broadcast %290 : vector<1x32xf32> to vector<8x32xf32>
    %292 = arith.addf %220, %291 : vector<8x32xf32>
    %293 = arith.maximumf %280, %286 : vector<8x32xf32>
    %294 = arith.maximumf %293, %292 : vector<8x32xf32>
    %295 = arith.subf %280, %294 : vector<8x32xf32>
    %296 = math.exp %295 : vector<8x32xf32>
    %297 = arith.subf %286, %294 : vector<8x32xf32>
    %298 = math.exp %297 : vector<8x32xf32>
    %299 = arith.subf %292, %294 : vector<8x32xf32>
    %300 = math.exp %299 : vector<8x32xf32>
    %301 = vector.broadcast %238 : vector<8x1xf32> to vector<8x32xf32>
    %302 = arith.mulf %301, %296 : vector<8x32xf32>
    %303 = vector.broadcast %256 : vector<8x1xf32> to vector<8x32xf32>
    %304 = arith.mulf %303, %298 : vector<8x32xf32>
    %305 = arith.addf %302, %304 : vector<8x32xf32>
    %306 = vector.broadcast %274 : vector<8x1xf32> to vector<8x32xf32>
    %307 = arith.mulf %306, %300 : vector<8x32xf32>
    %308 = arith.addf %305, %307 : vector<8x32xf32>
    %309 = arith.addf %296, %298 : vector<8x32xf32>
    %310 = arith.addf %309, %300 : vector<8x32xf32>
    %311 = arith.divf %308, %310 : vector<8x32xf32>
    %312 = vector.extract_strided_slice %23 {offsets = [0, 0], sizes = [8, 32], strides = [1, 1]} : vector<16x32xf32> to vector<8x32xf32>
    %cst_78 = arith.constant 5.000000e-01 : f32
    %313 = vector.broadcast %cst_78 : f32 to vector<8x32xf32>
    %314 = arith.mulf %313, %312 : vector<8x32xf32>
    %315 = arith.addf %50, %181 : vector<8x32xf32>
    %cst_79 = arith.constant 5.000000e-01 : f32
    %316 = vector.broadcast %cst_79 : f32 to vector<8x32xf32>
    %317 = arith.mulf %316, %315 : vector<8x32xf32>
    %318 = arith.addf %314, %317 : vector<8x32xf32>
    %319 = vector.extract_strided_slice %23 {offsets = [8, 0], sizes = [8, 32], strides = [1, 1]} : vector<16x32xf32> to vector<8x32xf32>
    %cst_80 = arith.constant 5.000000e-01 : f32
    %320 = vector.broadcast %cst_80 : f32 to vector<8x32xf32>
    %321 = arith.mulf %320, %319 : vector<8x32xf32>
    %322 = arith.addf %51, %311 : vector<8x32xf32>
    %cst_81 = arith.constant 5.000000e-01 : f32
    %323 = vector.broadcast %cst_81 : f32 to vector<8x32xf32>
    %324 = arith.mulf %323, %322 : vector<8x32xf32>
    %325 = arith.addf %321, %324 : vector<8x32xf32>
    %cst_82 = arith.constant 0.000000e+00 : f32
    %326 = vector.broadcast %cst_82 : f32 to vector<8x32xf32>
    %327 = tpu.concatenate %318, %326 in 1 : vector<8x32xf32>, vector<8x32xf32> -> vector<8x64xf32>
    %cst_83 = arith.constant 0.000000e+00 : f32
    %328 = vector.broadcast %cst_83 : f32 to vector<8x32xf32>
    %329 = tpu.concatenate %328, %325 in 1 : vector<8x32xf32>, vector<8x32xf32> -> vector<8x64xf32>
    %330 = tpu.concatenate %327, %329 in 0 : vector<8x64xf32>, vector<8x64xf32> -> vector<16x64xf32>
    %c640 = arith.constant 640 : index
    %c0_84 = arith.constant 0 : index
    %331 = vector.load %arg5[%c640, %c0_84] : memref<712x64xf32, #tpu.memory_space<vmem>>, vector<64x64xf32>
    %cst_85 = arith.constant dense<0.000000e+00> : vector<16x64xf32>
    %332 = tpu.matmul %330, %331, %cst_85 {dimension_numbers = #tpu.dot_dimension_numbers<[1], [0], [0], [1], [0, 0, 1, 1], [], []>} : vector<16x64xf32>, vector<64x64xf32>, vector<16x64xf32> -> vector<16x64xf32>
    %333 = vector.extract_strided_slice %332 {offsets = [0, 0], sizes = [16, 32], strides = [1, 1]} : vector<16x64xf32> to vector<16x32xf32>
    %c0_86 = arith.constant 0 : index
    %c0_87 = arith.constant 0 : index
    %334 = vector.load %arg3[%c0_86, %c0_87] : memref<8x2xi32, #tpu.memory_space<vmem>>, vector<8x1xi32>
    %c0_88 = arith.constant 0 : index
    %c1 = arith.constant 1 : index
    %335 = vector.load %arg3[%c0_88, %c1] : memref<8x2xi32, #tpu.memory_space<vmem>>, vector<8x1xi32>
    %336 = tpu.iota {dimensions = array<i32: 1>} : vector<8x16xi32>
    %337 = vector.broadcast %334 : vector<8x1xi32> to vector<8x16xi32>
    %338 = arith.cmpi eq, %336, %337 : vector<8x16xi32>
    %c8_i32 = arith.constant 8 : i32
    %339 = vector.broadcast %c8_i32 : i32 to vector<8x1xi32>
    %340 = arith.addi %335, %339 : vector<8x1xi32>
    %341 = vector.broadcast %340 : vector<8x1xi32> to vector<8x16xi32>
    %342 = arith.cmpi eq, %336, %341 : vector<8x16xi32>
    %343 = arith.ori %338, %342 : vector<8x16xi1>
    %344 = arith.extui %343 : vector<8x16xi1> to vector<8x16xi32>
    %345 = arith.sitofp %344 : vector<8x16xi32> to vector<8x16xf32>
    %cst_89 = arith.constant dense<0.000000e+00> : vector<8x32xf32>
    %346 = tpu.matmul %345, %333, %cst_89 {dimension_numbers = #tpu.dot_dimension_numbers<[1], [0], [0], [1], [0, 0, 1, 1], [], []>} : vector<8x16xf32>, vector<16x32xf32>, vector<8x32xf32> -> vector<8x32xf32>
    %c704 = arith.constant 704 : index
    %c0_90 = arith.constant 0 : index
    %347 = vector.load %arg5[%c704, %c0_90] : memref<712x64xf32, #tpu.memory_space<vmem>>, vector<8x64xf32>
    %348 = vector.extract_strided_slice %347 {offsets = [0, 0], sizes = [1, 32], strides = [1, 1]} : vector<8x64xf32> to vector<1x32xf32>
    %349 = vector.extract_strided_slice %347 {offsets = [0, 32], sizes = [1, 32], strides = [1, 1]} : vector<8x64xf32> to vector<1x32xf32>
    %350 = vector.extract_strided_slice %347 {offsets = [1, 0], sizes = [1, 1], strides = [1, 1]} : vector<8x64xf32> to vector<1x1xf32>
    %351 = vector.broadcast %348 : vector<1x32xf32> to vector<8x32xf32>
    %352 = arith.addf %346, %351 : vector<8x32xf32>
    %cst_91 = arith.constant 0.000000e+00 : f32
    %353 = vector.broadcast %cst_91 : f32 to vector<8x32xf32>
    %354 = arith.maximumf %352, %353 : vector<8x32xf32>
    %355 = vector.broadcast %349 : vector<1x32xf32> to vector<8x32xf32>
    %356 = arith.mulf %354, %355 : vector<8x32xf32>
    %cst_92 = arith.constant dense<0.000000e+00> : vector<8xf32>
    %357 = vector.multi_reduction <add>, %356, %cst_92 [1] : vector<8x32xf32> to vector<8xf32>
    %358 = vector.shape_cast %357 : vector<8xf32> to vector<8x1xf32>
    %359 = vector.broadcast %350 : vector<1x1xf32> to vector<8x1xf32>
    %360 = arith.addf %358, %359 : vector<8x1xf32>
    %361 = arith.negf %360 : vector<8x1xf32>
    %362 = math.exp %361 : vector<8x1xf32>
    %cst_93 = arith.constant 1.000000e+00 : f32
    %363 = vector.broadcast %cst_93 : f32 to vector<8x1xf32>
    %364 = arith.addf %363, %362 : vector<8x1xf32>
    %365 = arith.divf %363, %364 : vector<8x1xf32>
    %c0_94 = arith.constant 0 : index
    %c0_95 = arith.constant 0 : index
    %366 = vector.load %arg4[%c0_94, %c0_95] : memref<8x1xf32, #tpu.memory_space<vmem>>, vector<8x1xf32>
    %367 = math.log %365 : vector<8x1xf32>
    %cst_96 = arith.constant -1.000000e+02 : f32
    %368 = vector.broadcast %cst_96 : f32 to vector<8x1xf32>
    %369 = arith.maximumf %367, %368 : vector<8x1xf32>
    %cst_97 = arith.constant 1.000000e+00 : f32
    %370 = vector.broadcast %cst_97 : f32 to vector<8x1xf32>
    %371 = arith.subf %370, %365 : vector<8x1xf32>
    %372 = math.log %371 : vector<8x1xf32>
    %cst_98 = arith.constant -1.000000e+02 : f32
    %373 = vector.broadcast %cst_98 : f32 to vector<8x1xf32>
    %374 = arith.maximumf %372, %373 : vector<8x1xf32>
    %375 = arith.mulf %366, %369 : vector<8x1xf32>
    %cst_99 = arith.constant 1.000000e+00 : f32
    %376 = vector.broadcast %cst_99 : f32 to vector<8x1xf32>
    %377 = arith.subf %376, %366 : vector<8x1xf32>
    %378 = arith.mulf %377, %374 : vector<8x1xf32>
    %379 = arith.addf %375, %378 : vector<8x1xf32>
    %380 = tpu.iota {dimensions = array<i32: 1>} : vector<8x128xi32>
    %381 = tpu.iota {dimensions = array<i32: 0>} : vector<8x128xi32>
    %382 = arith.cmpi eq, %380, %381 : vector<8x128xi32>
    %cst_100 = arith.constant 0.000000e+00 : f32
    %383 = vector.shape_cast %365 : vector<8x1xf32> to vector<8x1xf32>
    %384 = vector.broadcast %383 : vector<8x1xf32> to vector<8x128xf32>
    %385 = vector.broadcast %cst_100 : f32 to vector<8x128xf32>
    %386 = arith.select %382, %384, %385 : vector<8x128xi1>, vector<8x128xf32>
    %c8_i32_101 = arith.constant 8 : i32
    %387 = vector.broadcast %c8_i32_101 : i32 to vector<8x128xi32>
    %388 = arith.cmpi eq, %380, %387 : vector<8x128xi32>
    %cst_102 = arith.constant 0.000000e+00 : f32
    %389 = vector.broadcast %cst_102 : f32 to vector<8x1xf32>
    %390 = arith.subf %389, %379 : vector<8x1xf32>
    %cst_103 = arith.constant 8.000000e+00 : f32
    %391 = vector.broadcast %cst_103 : f32 to vector<8x1xf32>
    %392 = arith.divf %390, %391 : vector<8x1xf32>
    %cst_104 = arith.constant 0.000000e+00 : f32
    %393 = vector.shape_cast %392 : vector<8x1xf32> to vector<8x1xf32>
    %394 = vector.broadcast %393 : vector<8x1xf32> to vector<8x128xf32>
    %395 = vector.broadcast %cst_104 : f32 to vector<8x128xf32>
    %396 = arith.select %388, %394, %395 : vector<8x128xi1>, vector<8x128xf32>
    %397 = arith.addf %386, %396 : vector<8x128xf32>
    %cst_105 = arith.constant dense<0.000000e+00> : vector<128xf32>
    %398 = vector.multi_reduction <add>, %397, %cst_105 [0] : vector<8x128xf32> to vector<128xf32>
    %399 = vector.shape_cast %398 : vector<128xf32> to vector<1x128xf32>
    %c0_106 = arith.constant 0 : index
    %c0_107 = arith.constant 0 : index
    %400 = vector.load %arg7[%c0_106, %c0_107] : memref<1x128xf32, #tpu.memory_space<vmem>>, vector<1x128xf32>
    tpu.vector_store %arg7[%c0_106, %c0_107], %399 {strides = array<i32>} : memref<1x128xf32, #tpu.memory_space<vmem>>, vector<1x128xf32>,
    return
  }
  func.func @transform_0(%arg0: i32) -> (i32, i32) {
    %c0_i32 = arith.constant 0 : i32
    %c0_i32_0 = arith.constant 0 : i32
    %c0_i32_1 = arith.constant 0 : i32
    return %c0_i32, %c0_i32_0 : i32, i32
  }
  func.func @transform_1(%arg0: i32) -> (i32, i32) {
    %c0_i32 = arith.constant 0 : i32
    %c0_i32_0 = arith.constant 0 : i32
    %c0_i32_1 = arith.constant 0 : i32
    return %c0_i32, %c0_i32_0 : i32, i32
  }
  func.func @transform_2(%arg0: i32) -> (i32, i32) {
    %c0_i32 = arith.constant 0 : i32
    %c0_i32_0 = arith.constant 0 : i32
    %c0_i32_1 = arith.constant 0 : i32
    return %c0_i32, %c0_i32_0 : i32, i32
  }
  func.func @transform_3(%arg0: i32) -> (i32, i32) {
    %c0_i32 = arith.constant 0 : i32
    %c0_i32_0 = arith.constant 0 : i32
    %c0_i32_1 = arith.constant 0 : i32
    return %c0_i32, %c0_i32_0 : i32, i32
  }
  func.func @transform_4(%arg0: i32) -> (i32, i32) {
    %c0_i32 = arith.constant 0 : i32
    %c0_i32_0 = arith.constant 0 : i32
    %c0_i32_1 = arith.constant 0 : i32
    return %c0_i32, %c0_i32_0 : i32, i32
  }
  func.func @transform_5(%arg0: i32) -> (i32, i32) {
    %c0_i32 = arith.constant 0 : i32
    %c0_i32_0 = arith.constant 0 : i32
    %c0_i32_1 = arith.constant 0 : i32
    return %c0_i32, %c0_i32_0 : i32, i32
  }
  func.func @transform_6(%arg0: i32) -> (i32, i32) {
    %c0_i32 = arith.constant 0 : i32
    %c0_i32_0 = arith.constant 0 : i32
    %c0_i32_1 = arith.constant 0 : i32
    return %c0_i32, %c0_i32_0 : i32, i32
  }
}

</mosaic_0001>

<bundles_post_ra>
// kernel: model_forward.1
= control target key start
LH: loop header
LB: loop body
LE: loop exit
PB: predicated region body
PF: predicated region fallthrough
CT: control target
= control target key end

     0   :  { %11 = vsyncpa [#allocation3], 0  ;;  %s3062_s21 = smov [#allocation2]   ;;  %s3718_s0 = inlined_call_operand.vmem [shape: f32[16,536], index: 0, kind: input, shape index: {}]   ;;  %s3719_s1 = inlined_call_operand.vmem [shape: f32[16,32], index: 1, kind: input, shape index: {}]   ;;  %s3720_s2 = inlined_call_operand.vmem [shape: s32[8,2], index: 2, kind: input, shape index: {}]   ;;  %s3721_s3 = inlined_call_operand.vmem [shape: f32[8,1], index: 3, kind: input, shape index: {}]   ;;  %s3722_s4 = inlined_call_operand.vmem [shape: f32[712,64], index: 4, kind: input, shape index: {}]   ;;  %s3723_s5 = inlined_call_operand.hbm [shape: f32[464,384], index: 5, kind: input, shape index: {}]   ;;  %s3724_s6 = inlined_call_operand.vmem [shape: f32[1,128], index: 6, kind: output, shape index: {}]  }
   0x1   :  { %s27_s22 = sshll.u32 %s3062_s21, 4  ;;  %s3038_s25 = scalar_lea.hbm %s3723_s5, 22272  ;;  %s28_s22 = int_to_ptr.vmem [resolvable:$true] %s27_s22 }
   0x2   :  { %p3039_p0 = scmp.ne.s32.totalorder %s3723_s5, %s3038_s25  ;;  %p3042_p1 = scmp.lt.u32.totalorder %s3038_s25, %s3723_s5 }
   0x4   :  { %p3044_p2 = pnand %p3042_p1, %p3039_p0 }
   0x6   :  { %3047 = shalt.err (!%p3044_p2)
}
   0x7   :  { %s3048_s30 = scalar_lea.vmem %s28_s22, 22272  ;;  %p3053_p4 = scmp.lt.s32.totalorder %s28_s22, %s28_s22 }
   0x8   :  { %p3049_p3 = scmp.ne.s32.totalorder %s28_s22, %s3048_s30  ;;  %p3054_p5 = scmp.lt.s32.totalorder %s3048_s30, %s3048_s30 }
   0xa   :  { %p3055_p6 = por %p3054_p5, %p3053_p4 }
   0xc   :  { %p3056_p7 = pnand %p3055_p6, %p3049_p3 }
   0xe   :  { %3059 = shalt.err (!%p3056_p7)
}
   0xf   :  { %s3063_s7 = smov 384   ;;  %s3064_s8 = smov 24  }
  0x10   :  { %33 = dma.hbm_to_vmem [thread:$0]  %s3723_s5, 22272, %s28_s22, [#allocation3], %s3063_s7, %s3063_s7, %s3064_s8  }
  0x11   :  { %3060 = dma.done.wait [#allocation3], 22272  }
  0x12   :  { %3061 = vsyncadd [#allocation3], 4294945024  ;;  %v63_v0 = vld [vmem:[%s3722_s4 + $0x80] sm:$0xff]  ;;  %v64_v1 = vld [vmem:[%s3722_s4 + $0x88] sm:$0xff]  ;;  %vm114_vm0 = vcmask 195584   ;;  %s3065_s17 = smov 112  }
  0x13   :  { %v95_v2 = vld [vmem:[%s3722_s4 + $0x180] sm:$0xff]  ;;  %v2637_v3 = vpack.c.bf16 %v64_v1, %v63_v0  ;;  %v96_v4 = vld [vmem:[%s3722_s4 + $0x188] sm:$0xff]  ;;  %v65_v11 = vld [vmem:[%s3722_s4 + $0x90] sm:$0xff]  ;;  %vm350_vm1 = vcmask 130048   ;;  %s3068_s5 = smov 64   ;;  %vm780_vm2 = vcmask 261120  }
  0x14   :  { %v47_v5 = vld [vmem:[%s3722_s4] sm:$0xff]  ;;  %v48_v6 = vld [vmem:[%s3722_s4 + $0x8] sm:$0xff]  ;;  %v2669_v7 = vpack.c.bf16 %v96_v4, %v95_v2  ;;  %v66_v13 = vld [vmem:[%s3722_s4 + $0x98] sm:$0xff]  ;;  %vm783_vm3 = vcmask 523264   ;;  %vm803_vm4 = vcmask 785408   ;;  %vm1662_vm11 = vcmask 785920  }
  0x15   :  { %v2639_v8 = vpack.c.bf16 %v48_v6, %v47_v5  ;;  %v79_v9 = vld [vmem:[%s3722_s4 + $0x100] sm:$0xff]  ;;  %v80_v10 = vld [vmem:[%s3722_s4 + $0x108] sm:$0xff]  ;;  %2638 = vmatprep.subr.bf16.mxu0 %v2637_v3  ;;  %v97_v14 = vld [vmem:[%s3722_s4 + $0x190] sm:$0xff]  ;;  %v2641_v16 = vpack.c.bf16 %v66_v13, %v65_v11  ;;  %vm1699_vm12 = vcmask 1048320   ;;  %vm1629_vm13 = vcmask 523520  }
  0x16   :  { %v2671_v12 = vpack.c.bf16 %v80_v10, %v79_v9  ;;  %v98_v15 = vld [vmem:[%s3722_s4 + $0x198] sm:$0xff]  ;;  %2670 = vmatprep.subr.bf16.mxu1 %v2669_v7  ;;  %v49_v18 = vld [vmem:[%s3722_s4 + $0x10] sm:$0xff]  ;;  %v67_v23 = vld [vmem:[%s3722_s4 + $0xa0] sm:$0xff]  ;;  %vm3073_vm14 = vmmov 0  }
  0x17   :  { %2640 = vmatpush3.bf16.msra.mxu0 %v2639_v8  ;;  %v2673_v17 = vpack.c.bf16 %v98_v15, %v97_v14  ;;  %v50_v19 = vld [vmem:[%s3722_s4 + $0x18] sm:$0xff]  ;;  %v81_v20 = vld [vmem:[%s3722_s4 + $0x110] sm:$0xff]  ;;  %v68_v24 = vld [vmem:[%s3722_s4 + $0xa8] sm:$0xff] }
  0x18   :  { %2672 = vmatpush3.bf16.msra.mxu1 %v2671_v12  ;;  %v2643_v21 = vpack.c.bf16 %v50_v19, %v49_v18  ;;  %v82_v22 = vld [vmem:[%s3722_s4 + $0x118] sm:$0xff]  ;;  %2642 = vmatprep.subr.bf16.mxu0 %v2641_v16  ;;  %v2645_v26 = vpack.c.bf16 %v68_v24, %v67_v23  ;;  %v99_v27 = vld [vmem:[%s3722_s4 + $0x1a0] sm:$0xff]  ;;  %v100_v28 = vld [vmem:[%s3722_s4 + $0x1a8] sm:$0xff] }
  0x19   :  { %2674 = vmatprep.subr.bf16.mxu1 %v2673_v17  ;;  %v2675_v25 = vpack.c.bf16 %v82_v22, %v81_v20  ;;  %v51_v29 = vld [vmem:[%s3722_s4 + $0x20] sm:$0xff]  ;;  %v2677_v30 = vpack.c.bf16 %v100_v28, %v99_v27  ;;  %v52_v31 = vld [vmem:[%s3722_s4 + $0x28] sm:$0xff]  ;;  %v69_v35 = vld [vmem:[%s3722_s4 + $0xb0] sm:$0xff] }
  0x1a   :  { %v83_v32 = vld [vmem:[%s3722_s4 + $0x120] sm:$0xff]  ;;  %v84_v33 = vld [vmem:[%s3722_s4 + $0x128] sm:$0xff]  ;;  %v2647_v34 = vpack.c.bf16 %v52_v31, %v51_v29  ;;  %v70_v36 = vld [vmem:[%s3722_s4 + $0xb8] sm:$0xff] }
  0x1b   :  { %2644 = vmatpush3.bf16.msra.mxu0 %v2643_v21  ;;  %v101_v37 = vld [vmem:[%s3722_s4 + $0x1b0] sm:$0xff]  ;;  %v2679_v38 = vpack.c.bf16 %v84_v33, %v83_v32  ;;  %v2649_v39 = vpack.c.bf16 %v70_v36, %v69_v35  ;;  %v102_v40 = vld [vmem:[%s3722_s4 + $0x1b8] sm:$0xff]  ;;  %v71_v46 = vld [vmem:[%s3722_s4 + $0xc0] sm:$0xff] }
  0x1c   :  { %2676 = vmatpush3.bf16.msra.mxu1 %v2675_v25  ;;  %2646 = vmatprep.subr.bf16.mxu0 %v2645_v26  ;;  %v53_v41 = vld [vmem:[%s3722_s4 + $0x30] sm:$0xff]  ;;  %v54_v42 = vld [vmem:[%s3722_s4 + $0x38] sm:$0xff]  ;;  %v2681_v43 = vpack.c.bf16 %v102_v40, %v101_v37  ;;  %v72_v47 = vld [vmem:[%s3722_s4 + $0xc8] sm:$0xff] }
  0x1d   :  { %2678 = vmatprep.subr.bf16.mxu1 %v2677_v30  ;;  %v85_v44 = vld [vmem:[%s3722_s4 + $0x130] sm:$0xff]  ;;  %v86_v45 = vld [vmem:[%s3722_s4 + $0x138] sm:$0xff]  ;;  %v103_v48 = vld [vmem:[%s3722_s4 + $0x1c0] sm:$0xff]  ;;  %v2651_v50 = vpack.c.bf16 %v54_v42, %v53_v41  ;;  %v2653_v52 = vpack.c.bf16 %v72_v47, %v71_v46 }
  0x1e   :  { %v104_v49 = vld [vmem:[%s3722_s4 + $0x1c8] sm:$0xff]  ;;  %v2683_v51 = vpack.c.bf16 %v86_v45, %v85_v44  ;;  %v55_v53 = vld [vmem:[%s3722_s4 + $0x40] sm:$0xff]  ;;  %v73_v58 = vld [vmem:[%s3722_s4 + $0xd0] sm:$0xff] }
  0x1f   :  { %2648 = vmatpush3.bf16.msra.mxu0 %v2647_v34  ;;  %v56_v54 = vld [vmem:[%s3722_s4 + $0x48] sm:$0xff]  ;;  %v87_v55 = vld [vmem:[%s3722_s4 + $0x140] sm:$0xff]  ;;  %v2685_v56 = vpack.c.bf16 %v104_v49, %v103_v48  ;;  %v74_v59 = vld [vmem:[%s3722_s4 + $0xd8] sm:$0xff] }
  0x20   :  { %2680 = vmatpush3.bf16.msra.mxu1 %v2679_v38  ;;  %2650 = vmatprep.subr.bf16.mxu0 %v2649_v39  ;;  %v88_v57 = vld [vmem:[%s3722_s4 + $0x148] sm:$0xff]  ;;  %v105_v60 = vld [vmem:[%s3722_s4 + $0x1d0] sm:$0xff]  ;;  %v106_v61 = vld [vmem:[%s3722_s4 + $0x1d8] sm:$0xff]  ;;  %v2655_v62 = vpack.c.bf16 %v56_v54, %v55_v53  ;;  %v2657_v0 = vpack.c.bf16 %v74_v59, %v73_v58 }
  0x21   :  { %2682 = vmatprep.subr.bf16.mxu1 %v2681_v43  ;;  %v2687_v63 = vpack.c.bf16 %v88_v57, %v87_v55  ;;  %v57_v1 = vld [vmem:[%s3722_s4 + $0x50] sm:$0xff]  ;;  %v58_v2 = vld [vmem:[%s3722_s4 + $0x58] sm:$0xff]  ;;  %v2689_v4 = vpack.c.bf16 %v106_v61, %v105_v60  ;;  %v75_v6 = vld [vmem:[%s3722_s4 + $0xe0] sm:$0xff] }
  0x22   :  { %v89_v3 = vld [vmem:[%s3722_s4 + $0x150] sm:$0xff]  ;;  %v90_v5 = vld [vmem:[%s3722_s4 + $0x158] sm:$0xff]  ;;  %v76_v7 = vld [vmem:[%s3722_s4 + $0xe8] sm:$0xff]  ;;  %v2659_v10 = vpack.c.bf16 %v58_v2, %v57_v1 }
  0x23   :  { %2652 = vmatpush3.bf16.msra.mxu0 %v2651_v50  ;;  %v107_v8 = vld [vmem:[%s3722_s4 + $0x1e0] sm:$0xff]  ;;  %v108_v9 = vld [vmem:[%s3722_s4 + $0x1e8] sm:$0xff]  ;;  %v2691_v13 = vpack.c.bf16 %v90_v5, %v89_v3  ;;  %v2661_v14 = vpack.c.bf16 %v76_v7, %v75_v6  ;;  %v40_v17 = vld [vmem:[%s3718_s0 + $0x18] sm:$0xff] }
  0x24   :  { %2684 = vmatpush3.bf16.msra.mxu1 %v2683_v51  ;;  %2654 = vmatprep.subr.bf16.mxu0 %v2653_v52  ;;  %v59_v11 = vld [vmem:[%s3722_s4 + $0x60] sm:$0xff]  ;;  %v60_v12 = vld [vmem:[%s3722_s4 + $0x68] sm:$0xff]  ;;  %v2693_v18 = vpack.c.bf16 %v108_v9, %v107_v8  ;;  %v77_v20 = vld [vmem:[%s3722_s4 + $0xf0] sm:$0xff] }
  0x25   :  { %2686 = vmatprep.subr.bf16.mxu1 %v2685_v56  ;;  %v91_v15 = vld [vmem:[%s3722_s4 + $0x160] sm:$0xff]  ;;  %v38_v16 = vld [vmem:[%s3718_s0 + $0x8] sm:$0xff]  ;;  %v78_v21 = vld [vmem:[%s3722_s4 + $0xf8] sm:$0xff]  ;;  %260 = vmatprep.mubr.f32.mxu1 %v40_v17  ;;  %v2663_v24 = vpack.c.bf16 %v60_v12, %v59_v11 }
  0x26   :  { %v92_v19 = vld [vmem:[%s3722_s4 + $0x168] sm:$0xff]  ;;  %185 = vmatprep.mubr.f32.mxu0 %v38_v16  ;;  %v109_v22 = vld [vmem:[%s3722_s4 + $0x1f0] sm:$0xff]  ;;  %v110_v23 = vld [vmem:[%s3722_s4 + $0x1f8] sm:$0xff]  ;;  %v2665_v26 = vpack.c.bf16 %v78_v21, %v77_v20 }
  0x27   :  { %2656 = vmatpush3.bf16.msra.mxu0 %v2655_v62  ;;  %v2695_v25 = vpack.c.bf16 %v92_v19, %v91_v15  ;;  %v61_v27 = vld [vmem:[%s3722_s4 + $0x70] sm:$0xff]  ;;  %v62_v28 = vld [vmem:[%s3722_s4 + $0x78] sm:$0xff]  ;;  %v2697_v29 = vpack.c.bf16 %v110_v23, %v109_v22  ;;  %v111_v32 = vld [vmem:[%s3722_s4 + $0x200] sm:$0xff] }
  0x28   :  { %2688 = vmatpush3.bf16.msra.mxu1 %v2687_v63  ;;  %2658 = vmatprep.subr.bf16.mxu0 %v2657_v0  ;;  %v93_v30 = vld [vmem:[%s3722_s4 + $0x170] sm:$0xff]  ;;  %v94_v31 = vld [vmem:[%s3722_s4 + $0x178] sm:$0xff]  ;;  %v112_v33 = vld [vmem:[%s3722_s4 + $0x208] sm:$0xff]  ;;  %v2667_v34 = vpack.c.bf16 %v62_v28, %v61_v27 }
  0x29   :  { %2690 = vmatprep.subr.bf16.mxu1 %v2689_v4  ;;  %v2699_v35 = vpack.c.bf16 %v94_v31, %v93_v30  ;;  %v2701_v36 = vpack.c.bf16 %v112_v33, %v111_v32  ;;  %v37_v37 = vld [vmem:[%s3718_s0] sm:$0xff]  ;;  %v39_v38 = vld [vmem:[%s3718_s0 + $0x10] sm:$0xff]  ;;  %v42_v42 = vld [vmem:[%s3718_s0 + $0x28] sm:$0xff] }
  0x2a   :  { %v43_v39 = vld [vmem:[%s3718_s0 + $0x30] sm:$0xff]  ;;  %v45_v40 = vld [vmem:[%s3718_s0 + $0x40] sm:$0xff]  ;;  %v44_v43 = vld [vmem:[%s3718_s0 + $0x38] sm:$0xff] }
  0x2b   :  { %2660 = vmatpush3.bf16.msra.mxu0 %v2659_v10  ;;  %v113_v41 = vld [vmem:[%s3722_s4 + $0x210] sm:$0xff]  ;;  %v41_v44 = vld [vmem:[%s3718_s0 + $0x20] sm:$0xff]  ;;  %v46_v45 = vld [vmem:[%s3718_s0 + $0x48] sm:$0xff]  ;;  %s3066_s0 = smov 96  }
  0x2c   :  { %2692 = vmatpush3.bf16.msra.mxu1 %v2691_v13  ;;  %2662 = vmatprep.subr.bf16.mxu0 %v2661_v14  ;;  %v346_v46 = vld [vmem:[%s3719_s1] sm:$0xff]  ;;  %v3358_v47 = vld [vmem:[%s3719_s1 + $0x8] sm:$0xff]  ;;  %s3067_s1 = smov 32  }
  0x2d   :  { %2694 = vmatprep.subr.bf16.mxu1 %v2693_v18  ;;  %673 = vrot.lane.b32.xlu0 %v346_v46, %s3065_s17 }
  0x2f   :  { %2664 = vmatpush3.bf16.msra.mxu0 %v2663_v24 }
  0x30   :  { %2696 = vmatpush3.bf16.msra.mxu1 %v2695_v25  ;;  %2666 = vmatprep.subr.bf16.mxu0 %v2665_v26 }
  0x31   :  { %2698 = vmatprep.subr.bf16.mxu1 %v2697_v29  ;;  %675 = vrot.lane.b32.xlu0 %v3358_v47, %s3065_s17 }
  0x33   :  { %2668 = vmatpush3.bf16.msra.mxu0 %v2667_v34 }
  0x34   :  { %2700 = vmatpush3.bf16.msra.mxu1 %v2699_v35  ;;  %v786_v35 = vld [vmem:[%s3722_s4 + $0x218] sm:$0xff] }
  0x35   :  { %2702 = vmatprep.subr.bf16.mxu1 %v2701_v36 }
  0x36   :  { %186 = vmatmul.mubr.f32.vlgmr.msra.gmra.mrb[0].mxu0 %v37_v37  ;;  %v788_v37 = vld [vmem:[%s3722_s4 + $0x228] sm:$0xff] }
  0x37   :  { %261 = vmatmul.mubr.f32.vlgmr.msra.gmra.mrb[0].mxu1 %v39_v38  ;;  %190 = vmatprep.mubr.f32.mxu0 %v43_v39  ;;  %v789_v39 = vld [vmem:[%s3722_s4 + $0x230] sm:$0xff] }
  0x38   :  { %265 = vmatprep.mubr.f32.mxu1 %v45_v40  ;;  %2704 = vmatpush3.bf16.msra.mxu1 %v2701_v36  ;;  %v787_v36 = vld [vmem:[%s3722_s4 + $0x220] sm:$0xff]  ;;  %v2729_v40 = vpack.c.bf16 %v789_v39, %v788_v37  ;;  %v1103_v37 = vld [vmem:[#allocation2 + $0xf0] sm:$0xff]  ;;  %v1110_v39 = vld [vmem:[#allocation2 + $0x128] sm:$0xff] }
  0x39   :  { %2490 = vmatprep.subr.mxu1 %v113_v41  ;;  %v2725_v38 = vpack.c.bf16 %v787_v36, %v786_v35  ;;  %v1100_v35 = vld [vmem:[#allocation2 + $0xd8] sm:$0xff] }
  0x3a   :  { %191 = vmatmul.mubr.f32.gmra.mrb[2].mxu0 %v42_v42  ;;  %v791_v42 = vld [vmem:[%s3722_s4 + $0x240] sm:$0xff] }
  0x3b   :  { %266 = vmatmul.mubr.f32.gmra.mrb[2].mxu1 %v44_v43  ;;  %2506 = vmatprep.mubr.msk.f32.mxu0 %vm350_vm1, %v346_v46 }
  0x3c   :  { %2491 = vmatpush3.msra.mxu1 %v113_v41  ;;  %2492 = vmatprep.mubr.msk.f32.mxu1 %vm114_vm0, %v41_v44  ;;  %v790_v41 = vld [vmem:[%s3722_s4 + $0x238] sm:$0xff]  ;;  %v792_v44 = vld [vmem:[%s3722_s4 + $0x248] sm:$0xff] }
  0x3d   :  { %v2733_v43 = vpack.c.bf16 %v791_v42, %v790_v41  ;;  %v1106_v42 = vld [vmem:[#allocation2 + $0x108] sm:$0xff] }
  0x3f   :  { %2493 = vmatmul.mubr.msk.f32.vlgmr.msra.gmra.mrb[4].mxu1 %vm114_vm0, %v46_v45  ;;  %v793_v45 = vld [vmem:[%s3722_s4 + $0x250] sm:$0xff] }
  0x40   :  { %2499 = vmatprep.mubr.msk.f32.mxu1 %vm350_vm1, %v346_v46 }
  0x9f   :  { %v674_v19 = vpop.permute.xlu0 %673 }
  0xa3   :  { %v676_v34 = vpop.permute.xlu0 %675 }
 0x109   :  { %v2324_v48 = vpop.f32.mrb[0].mxu0 }
 0x10a   :  { %v2362_v49 = vpop.f32.mrb[0].mxu1  ;;  %v2325_v50 = vpop.f32.mrb[1].mxu0 }
 0x10b   :  { %v2326_v51 = vadd.f32 %v2325_v50, %v2324_v48  ;;  %v2363_v52 = vpop.f32.mrb[1].mxu1  ;;  %v795_v48 = vld [vmem:[%s3722_s4 + $0x260] sm:$0xff]  ;;  %v796_v50 = vld [vmem:[%s3722_s4 + $0x268] sm:$0xff] }
 0x10c   :  { %v2364_v53 = vadd.f32 %v2363_v52, %v2362_v49 }
 0x10d   :  { %v2327_v54 = vpop.f32.mrb[2].mxu0 }
 0x10e   :  { %v2365_v55 = vpop.f32.mrb[2].mxu1  ;;  %v2328_v56 = vpop.f32.mrb[3].mxu0  ;;  %v263_v57 = vadd.f32 %v2364_v53, %v2326_v51  ;;  %v797_v51 = vld [vmem:[%s3722_s4 + $0x270] sm:$0xff]  ;;  %v886_v53 = vld [vmem:[#allocation2 + $0x8] sm:$0xff] }
 0x10f   :  { %v2329_v58 = vadd.f32 %v2328_v56, %v2327_v54  ;;  %v2366_v59 = vpop.f32.mrb[3].mxu1  ;;  %v2745_v52 = vpack.c.bf16 %v797_v51, %v796_v50  ;;  %v889_v54 = vld [vmem:[#allocation2 + $0x20] sm:$0xff]  ;;  %v1119_v50 = vld [vmem:[#allocation2 + $0x170] sm:$0xff]  ;;  %v1122_v51 = vld [vmem:[#allocation2 + $0x188] sm:$0xff] }
 0x110   :  { %v2367_v60 = vadd.f32 %v2366_v59, %v2365_v55  ;;  %v885_v55 = vld [vmem:[#allocation2] sm:$0xff]  ;;  %v2749_v56 = vpack.c.bf16 %v889_v54, %v886_v53  ;;  %v895_v59 = vld [vmem:[#allocation2 + $0x50] sm:$0xff]  ;;  %v2793_v53 = vpack.c.bf16 %v1122_v51, %v1119_v50  ;;  %v1118_v54 = vld [vmem:[#allocation2 + $0x168] sm:$0xff] }
 0x111   :  { %v1172_v50 = vld [vmem:[#allocation2 + $0x318] sm:$0xff]  ;;  %v1175_v51 = vld [vmem:[#allocation2 + $0x330] sm:$0xff] }
 0x112   :  { %v268_v61 = vadd.f32 %v2367_v60, %v2329_v58  ;;  %v2494_v62 = vpop.f32.mrb[4].mxu1  ;;  %v892_v58 = vld [vmem:[#allocation2 + $0x38] sm:$0xff] }
 0x113   :  { %v337_v63 = vpop.f32.mrb[5].mxu1 }
 0x114   :  { %v3363_v0 = vadd.f32 %v2494_v62, %v268_v61  ;;  %v3365_v1 = vadd.f32 %v337_v63, %v263_v57  ;;  %v888_v57 = vld [vmem:[#allocation2 + $0x18] sm:$0xff]  ;;  %v2753_v61 = vpack.c.bf16 %v895_v59, %v892_v58  ;;  %v891_v62 = vld [vmem:[#allocation2 + $0x30] sm:$0xff]  ;;  %v894_v63 = vld [vmem:[#allocation2 + $0x48] sm:$0xff] }
 0x115   :  { %v2751_v60 = vpack.c.bf16 %v888_v57, %v885_v55  ;;  %v1121_v55 = vld [vmem:[#allocation2 + $0x180] sm:$0xff]  ;;  %v1128_v57 = vld [vmem:[#allocation2 + $0x1b8] sm:$0xff] }
 0x116   :  { %760 = vrot.lane.b32.xlu0 %v3363_v0, %s3066_s0  ;;  %758 = vrot.lane.b32.xlu1 %v3365_v1, %s3066_s0  ;;  %v2705_v2 = vpack.c.bf16 %v3363_v0, %v3365_v1  ;;  %v349_v8 = vmul.f32 0.2, %v3363_v0  ;;  %v348_v9 = vmul.f32 0.2, %v3365_v1  ;;  %v2795_v58 = vpack.c.bf16 %v1121_v55, %v1118_v54 }
 0x117   :  { %v2831_v54 = vpack.c.bf16 %v1175_v51, %v1172_v50  ;;  %v1180_v50 = vld [vmem:[#allocation2 + $0x358] sm:$0xff]  ;;  %v1183_v51 = vld [vmem:[#allocation2 + $0x370] sm:$0xff] }
 0x118   :  { %2706 = vmatprep.subr.bf16.mxu1 %v2705_v2 }
 0x119   :  { %2708 = vmatpush3.bf16.msra.mxu1 %v2705_v2  ;;  %v898_v2 = vld [vmem:[#allocation2 + $0x68] sm:$0xff] }
 0x11c   :  { %2500 = vmatmul.mubr.msk.f32.vlgmr.msra.gmra.mrb[6].mxu1 %vm350_vm1, %v3358_v47 }
 0x11d   :  { %2513 = vmatprep.mubr.msk.f32.mxu1 %vm350_vm1, %v346_v46 }
 0x1ef   :  { %v2501_v3 = vpop.f32.mrb[6].mxu1 }
 0x1f0   :  { %v423_v4 = vpop.f32.mrb[7].mxu1  ;;  %v433_v6 = vmul.f32 0.2, %v2501_v3 }
 0x1f1   :  { %v2709_v5 = vpack.c.bf16 %v2501_v3, %v423_v4  ;;  %v432_v7 = vmul.f32 0.2, %v423_v4  ;;  %v901_v3 = vld [vmem:[#allocation2 + $0x80] sm:$0xff]  ;;  %v2755_v4 = vpack.c.bf16 %v894_v63, %v891_v62  ;;  %v1131_v62 = vld [vmem:[#allocation2 + $0x1d0] sm:$0xff]  ;;  %v1134_v63 = vld [vmem:[#allocation2 + $0x1e8] sm:$0xff] }
 0x1f2   :  { %v435_v11 = vadd.f32 %v433_v6, %v349_v8  ;;  %v897_v6 = vld [vmem:[#allocation2 + $0x60] sm:$0xff]  ;;  %v904_v8 = vld [vmem:[#allocation2 + $0x98] sm:$0xff] }
 0x1f3   :  { %2710 = vmatprep.subr.bf16.mxu0 %v2709_v5  ;;  %v434_v14 = vadd.f32 %v432_v7, %v348_v9  ;;  %v900_v7 = vld [vmem:[#allocation2 + $0x78] sm:$0xff]  ;;  %v907_v9 = vld [vmem:[#allocation2 + $0xb0] sm:$0xff] }
 0x1f4   :  { %2712 = vmatpush3.bf16.msra.mxu0 %v2709_v5  ;;  %v2757_v5 = vpack.c.bf16 %v901_v3, %v898_v2  ;;  %v2801_v3 = vpack.c.bf16 %v1134_v63, %v1131_v62  ;;  %v799_v62 = vlaneseq }
 0x1f6   :  { %v3444_v63 = vshrl.u32 %v799_v62, 7 }
 0x1f7   :  { %2507 = vmatmul.mubr.msk.f32.vlgmr.msra.gmra.mrb[4].mxu0 %vm350_vm1, %v3358_v47 }
 0x1f8   :  { %2520 = vmatprep.mubr.msk.f32.mxu0 %vm350_vm1, %v346_v46  ;;  %v2737_v46 = vpack.c.bf16 %v793_v45, %v792_v44  ;;  %v1113_v44 = vld [vmem:[#allocation2 + $0x140] sm:$0xff]  ;;  %v1116_v45 = vld [vmem:[#allocation2 + $0x158] sm:$0xff] }
 0x2ca   :  { %v2508_v10 = vpop.f32.mrb[4].mxu0 }
 0x2cb   :  { %v512_v12 = vmul.f32 0.2, %v2508_v10  ;;  %v502_v13 = vpop.f32.mrb[5].mxu0 }
 0x2cc   :  { %v511_v15 = vmul.f32 0.2, %v502_v13  ;;  %v2713_v16 = vpack.c.bf16 %v2508_v10, %v502_v13  ;;  %v2759_v10 = vpack.c.bf16 %v900_v7, %v897_v6  ;;  %v1137_v6 = vld [vmem:[#allocation2 + $0x200] sm:$0xff]  ;;  %v1140_v7 = vld [vmem:[#allocation2 + $0x218] sm:$0xff] }
 0x2cd   :  { %v514_v17 = vadd.f32 %v512_v12, %v435_v11  ;;  %v2761_v12 = vpack.c.bf16 %v907_v9, %v904_v8  ;;  %v2805_v9 = vpack.c.bf16 %v1140_v7, %v1137_v6  ;;  %v896_v6 = vld [vmem:[#allocation2 + $0x58] sm:$0xff] }
 0x2ce   :  { %v513_v18 = vadd.f32 %v511_v15, %v434_v14  ;;  %2714 = vmatprep.subr.bf16.mxu1 %v2713_v16  ;;  %v759_v14 = vpop.permute.xlu1 %758 }
 0x2cf   :  { %2716 = vmatpush3.bf16.msra.mxu1 %v2713_v16 }
 0x2d2   :  { %2514 = vmatmul.mubr.msk.f32.vlgmr.msra.gmra.mrb[8].mxu1 %vm350_vm1, %v3358_v47 }
 0x2d3   :  { %2527 = vmatprep.mubr.msk.f32.mxu1 %vm350_vm1, %v674_v19 }
 0x3a5   :  { %v2515_v20 = vpop.f32.mrb[8].mxu1 }
 0x3a6   :  { %v591_v21 = vmul.f32 0.2, %v2515_v20  ;;  %v581_v22 = vpop.f32.mrb[9].mxu1 }
 0x3a7   :  { %v590_v23 = vmul.f32 0.2, %v581_v22  ;;  %v2717_v24 = vpack.c.bf16 %v2515_v20, %v581_v22 }
 0x3a8   :  { %v593_v25 = vadd.f32 %v591_v21, %v514_v17  ;;  %v761_v17 = vpop.permute.xlu0 %760 }
 0x3a9   :  { %v592_v26 = vadd.f32 %v590_v23, %v513_v18  ;;  %2718 = vmatprep.subr.bf16.mxu0 %v2717_v24 }
 0x3aa   :  { %2720 = vmatpush3.bf16.msra.mxu0 %v2717_v24  ;;  %v903_v24 = vld [vmem:[#allocation2 + $0x90] sm:$0xff] }
 0x3ab   :  { %2726 = vmatprep.subr.bf16.mxu0 %v2725_v38 }
 0x3ad   :  { %2521 = vmatmul.mubr.msk.f32.vlgmr.msra.gmra.mrb[6].mxu0 %vm350_vm1, %v3358_v47  ;;  %v794_v47 = vld [vmem:[%s3722_s4 + $0x258] sm:$0xff] }
 0x3ae   :  { %2728 = vmatpush3.bf16.msra.mxu0 %v2725_v38  ;;  %v2741_v49 = vpack.c.bf16 %v795_v48, %v794_v47  ;;  %v1107_v38 = vld [vmem:[#allocation2 + $0x110] sm:$0xff]  ;;  %v2789_v47 = vpack.c.bf16 %v1116_v45, %v1113_v44  ;;  %v1112_v48 = vld [vmem:[#allocation2 + $0x138] sm:$0xff]  ;;  %v1166_v44 = vld [vmem:[#allocation2 + $0x2e8] sm:$0xff] }
 0x3af   :  { %2730 = vmatprep.subr.bf16.mxu0 %v2729_v40  ;;  %v2785_v41 = vpack.c.bf16 %v1110_v39, %v1107_v38  ;;  %v1160_v38 = vld [vmem:[#allocation2 + $0x2b8] sm:$0xff]  ;;  %v1163_v39 = vld [vmem:[#allocation2 + $0x2d0] sm:$0xff]  ;;  %v1169_v45 = vld [vmem:[#allocation2 + $0x300] sm:$0xff] }
 0x3b2   :  { %2732 = vmatpush3.bf16.msra.mxu0 %v2729_v40  ;;  %v2783_v40 = vpack.c.bf16 %v1103_v37, %v1100_v35  ;;  %v1164_v35 = vld [vmem:[#allocation2 + $0x2d8] sm:$0xff] }
 0x3b3   :  { %2734 = vmatprep.subr.bf16.mxu0 %v2733_v43 }
 0x3b6   :  { %2736 = vmatpush3.bf16.msra.mxu0 %v2733_v43  ;;  %v1109_v43 = vld [vmem:[#allocation2 + $0x120] sm:$0xff] }
 0x3b7   :  { %2738 = vmatprep.subr.bf16.mxu0 %v2737_v46 }
 0x3ba   :  { %2740 = vmatpush3.bf16.msra.mxu0 %v2737_v46  ;;  %v2787_v46 = vpack.c.bf16 %v1109_v43, %v1106_v42  ;;  %v2823_v42 = vpack.c.bf16 %v1163_v39, %v1160_v38  ;;  %v1168_v38 = vld [vmem:[#allocation2 + $0x2f8] sm:$0xff]  ;;  %v1171_v39 = vld [vmem:[#allocation2 + $0x310] sm:$0xff] }
 0x3bb   :  { %2742 = vmatprep.subr.bf16.mxu0 %v2741_v49 }
 0x3be   :  { %2744 = vmatpush3.bf16.msra.mxu0 %v2741_v49  ;;  %v1115_v49 = vld [vmem:[#allocation2 + $0x150] sm:$0xff] }
 0x3bf   :  { %2746 = vmatprep.subr.bf16.mxu0 %v2745_v52 }
 0x3c2   :  { %2748 = vmatpush3.bf16.msra.mxu0 %v2745_v52  ;;  %v2791_v52 = vpack.c.bf16 %v1115_v49, %v1112_v48  ;;  %v2827_v48 = vpack.c.bf16 %v1169_v45, %v1166_v44  ;;  %v1174_v44 = vld [vmem:[#allocation2 + $0x328] sm:$0xff]  ;;  %v1177_v45 = vld [vmem:[#allocation2 + $0x340] sm:$0xff] }
 0x480   :  { %v2522_v27 = vpop.f32.mrb[6].mxu0 }
 0x481   :  { %v670_v28 = vmul.f32 0.2, %v2522_v27  ;;  %v660_v29 = vpop.f32.mrb[7].mxu0  ;;  %v887_v27 = vld [vmem:[#allocation2 + $0x10] sm:$0xff] }
 0x482   :  { %v669_v30 = vmul.f32 0.2, %v660_v29 }
 0x483   :  { %v3386_v31 = vadd.f32 %v670_v28, %v593_v25  ;;  %v906_v25 = vld [vmem:[#allocation2 + $0xa8] sm:$0xff] }
 0x484   :  { %v3388_v32 = vadd.f32 %v669_v30, %v592_v26  ;;  %v2763_v26 = vpack.c.bf16 %v906_v25, %v903_v24  ;;  %v890_v28 = vld [vmem:[#allocation2 + $0x28] sm:$0xff]  ;;  %v3069_v30 = vmov 0.0   ;;  %v1155_v24 = vld [vmem:[#allocation2 + $0x290] sm:$0xff] }
 0x485   :  { %768 = vrot.lane.b32.xlu1 %v3386_v31, %s3067_s1  ;;  %v3439_v29 = vpack.c.bf16 %v890_v28, %v887_v27  ;;  %v1158_v25 = vld [vmem:[#allocation2 + $0x2a8] sm:$0xff] }
 0x486   :  { %v2721_v33 = vpack.c.bf16 %v3386_v31, %v3388_v32  ;;  %v2817_v27 = vpack.c.bf16 %v1158_v25, %v1155_v24  ;;  %v1154_v28 = vld [vmem:[#allocation2 + $0x288] sm:$0xff] }
 0x488   :  { %2722 = vmatprep.subr.bf16.mxu1 %v2721_v33 }
 0x489   :  { %766 = vrot.lane.b32.xlu1 %v3388_v32, %s3067_s1  ;;  %2724 = vmatpush3.bf16.msra.mxu1 %v2721_v33  ;;  %v1101_v33 = vld [vmem:[#allocation2 + $0xe0] sm:$0xff] }
 0x48a   :  { %2750 = vmatprep.subr.bf16.mxu1 %v2749_v56  ;;  %v1125_v56 = vld [vmem:[#allocation2 + $0x1a0] sm:$0xff] }
 0x48b   :  { %v2797_v59 = vpack.c.bf16 %v1128_v57, %v1125_v56  ;;  %v1178_v56 = vld [vmem:[#allocation2 + $0x348] sm:$0xff]  ;;  %v1181_v57 = vld [vmem:[#allocation2 + $0x360] sm:$0xff] }
 0x48c   :  { %2528 = vmatmul.mubr.msk.f32.vlgmr.msra.gmra.mrb[10].mxu1 %vm350_vm1, %v676_v34  ;;  %v1104_v34 = vld [vmem:[#allocation2 + $0xf8] sm:$0xff] }
 0x48d   :  { %2752 = vmatpush1.bf16.msra.mxu1 %v2751_v60  ;;  %994 = vmatprep.mubr.f32.mxu1 %v3069_v30  ;;  %v2781_v36 = vpack.c.bf16 %v1104_v34, %v1101_v33  ;;  %v1124_v60 = vld [vmem:[#allocation2 + $0x198] sm:$0xff]  ;;  %v1157_v33 = vld [vmem:[#allocation2 + $0x2a0] sm:$0xff] }
 0x48e   :  { %2754 = vmatprep.subr.bf16.mxu1 %v2753_v61  ;;  %v1127_v61 = vld [vmem:[#allocation2 + $0x1b0] sm:$0xff]  ;;  %v1161_v34 = vld [vmem:[#allocation2 + $0x2c0] sm:$0xff] }
 0x48f   :  { %2782 = vmatprep.subr.bf16.mxu0 %v2781_v36  ;;  %v2799_v2 = vpack.c.bf16 %v1127_v61, %v1124_v60  ;;  %v2819_v36 = vpack.c.bf16 %v1157_v33, %v1154_v28  ;;  %v2821_v37 = vpack.c.bf16 %v1164_v35, %v1161_v34  ;;  %v2835_v60 = vpack.c.bf16 %v1181_v57, %v1178_v56  ;;  %v1162_v28 = vld [vmem:[#allocation2 + $0x2c8] sm:$0xff]  ;;  %v1165_v33 = vld [vmem:[#allocation2 + $0x2e0] sm:$0xff] }
 0x490   :  { %v2885_v35 = vpack.c.bf16 %v1165_v33, %v1162_v28  ;;  %v1186_v56 = vld [vmem:[#allocation2 + $0x388] sm:$0xff]  ;;  %v1189_v57 = vld [vmem:[#allocation2 + $0x3a0] sm:$0xff] }
 0x491   :  { %2756 = vmatpush1.bf16.msra.mxu1 %v2755_v4  ;;  %v1130_v4 = vld [vmem:[#allocation2 + $0x1c8] sm:$0xff] }
 0x492   :  { %2758 = vmatprep.subr.bf16.mxu1 %v2757_v5  ;;  %v1133_v5 = vld [vmem:[#allocation2 + $0x1e0] sm:$0xff] }
 0x493   :  { %v2803_v8 = vpack.c.bf16 %v1133_v5, %v1130_v4  ;;  %v893_v5 = vld [vmem:[#allocation2 + $0x40] sm:$0xff] }
 0x495   :  { %2760 = vmatpush1.bf16.msra.mxu1 %v2759_v10  ;;  %v1136_v10 = vld [vmem:[#allocation2 + $0x1f8] sm:$0xff] }
 0x496   :  { %2762 = vmatprep.subr.bf16.mxu1 %v2761_v12  ;;  %v1143_v12 = vld [vmem:[#allocation2 + $0x230] sm:$0xff] }
 0x499   :  { %2764 = vmatpush1.bf16.msra.mxu1 %v2763_v26 }
 0x49a   :  { %2766 = vmatprep.subr.bf16.mxu1 %v3439_v29 }
 0x4f7   :  { %v769_v15 = vpop.permute.xlu1 %768 }
 0x4f8   :  { %v782_v21 = vsel %vm780_vm2, %v761_v17, %v769_v15  ;;  %v1145_v17 = vld [vmem:[#allocation2 + $0x240] sm:$0xff] }
 0x4fb   :  { %v767_v16 = vpop.permute.xlu1 %766 }
 0x4fc   :  { %v781_v19 = vsel %vm780_vm2, %v759_v14, %v767_v16  ;;  %v1142_v16 = vld [vmem:[#allocation2 + $0x228] sm:$0xff] }
 0x55f   :  { %v2529_v11 = vpop.f32.mrb[10].mxu1 }
 0x560   :  { %776 = vrot.lane.b32.xlu1 %v2529_v11, %s3068_s5  ;;  %v747_v13 = vpop.f32.mrb[11].mxu1  ;;  %v1139_v11 = vld [vmem:[#allocation2 + $0x210] sm:$0xff] }
 0x561   :  { %774 = vrot.lane.b32.xlu0 %v747_v13, %s3068_s5  ;;  %v1146_v13 = vld [vmem:[#allocation2 + $0x248] sm:$0xff]  ;;  %v2807_v14 = vpack.c.bf16 %v1139_v11, %v1136_v10  ;;  %v2769_v10 = vpack.c.bf16 %v896_v6, %v893_v5  ;;  %v899_v11 = vld [vmem:[#allocation2 + $0x70] sm:$0xff]  ;;  %v1141_v5 = vld [vmem:[#allocation2 + $0x220] sm:$0xff] }
 0x562   :  { %v2809_v15 = vpack.c.bf16 %v1146_v13, %v1143_v12  ;;  %v902_v12 = vld [vmem:[#allocation2 + $0x88] sm:$0xff] }
 0x5d2   :  { %v777_v18 = vpop.permute.xlu1 %776 }
 0x5d3   :  { %v775_v20 = vpop.permute.xlu0 %774  ;;  %v785_v23 = vsel %vm783_vm3, %v782_v21, %v777_v18  ;;  %v1149_v18 = vld [vmem:[#allocation2 + $0x260] sm:$0xff] }
 0x5d4   :  { %v784_v22 = vsel %vm783_vm3, %v781_v19, %v775_v20  ;;  %v1152_v19 = vld [vmem:[#allocation2 + $0x278] sm:$0xff]  ;;  %v2811_v20 = vpack.c.bf16 %v1145_v17, %v1142_v16 }
 0x5d5   :  { %2554 = vmatprep.mubr.msk.f32.mxu0 %vm803_vm4, %v784_v22  ;;  %v2813_v21 = vpack.c.bf16 %v1152_v19, %v1149_v18  ;;  %v1148_v22 = vld [vmem:[#allocation2 + $0x258] sm:$0xff]  ;;  %v1150_v18 = vld [vmem:[#allocation2 + $0x268] sm:$0xff]  ;;  %v1153_v19 = vld [vmem:[#allocation2 + $0x280] sm:$0xff] }
 0x5d6   :  { %2555 = vmatmul.mubr.msk.f32.vlgmr.msra.gmra.mrb[8].mxu0 %vm803_vm4, %v785_v23  ;;  %v1151_v23 = vld [vmem:[#allocation2 + $0x270] sm:$0xff]  ;;  %v908_v16 = vld [vmem:[#allocation2 + $0xb8] sm:$0xff] }
 0x5d7   :  { %2784 = vmatpush1.bf16.msra.mxu0 %v2783_v40  ;;  %v2815_v26 = vpack.c.bf16 %v1151_v23, %v1148_v22  ;;  %v1167_v40 = vld [vmem:[#allocation2 + $0x2f0] sm:$0xff]  ;;  %v1156_v22 = vld [vmem:[#allocation2 + $0x298] sm:$0xff] }
 0x5d8   :  { %2786 = vmatprep.subr.bf16.mxu0 %v2785_v41  ;;  %v1170_v41 = vld [vmem:[#allocation2 + $0x308] sm:$0xff]  ;;  %v1159_v23 = vld [vmem:[#allocation2 + $0x2b0] sm:$0xff] }
 0x5d9   :  { %v2825_v43 = vpack.c.bf16 %v1170_v41, %v1167_v40  ;;  %v2881_v25 = vpack.c.bf16 %v1159_v23, %v1156_v22  ;;  %v2889_v41 = vpack.c.bf16 %v1171_v39, %v1168_v38  ;;  %v1201_v22 = vld [vmem:[#allocation2 + $0x400] sm:$0xff]  ;;  %v1203_v38 = vld [vmem:[#allocation2 + $0x410] sm:$0xff] }
 0x5db   :  { %2788 = vmatpush1.bf16.msra.mxu0 %v2787_v46  ;;  %v1173_v46 = vld [vmem:[#allocation2 + $0x320] sm:$0xff] }
 0x5dc   :  { %2790 = vmatprep.subr.bf16.mxu0 %v2789_v47  ;;  %v1176_v47 = vld [vmem:[#allocation2 + $0x338] sm:$0xff] }
 0x5dd   :  { %v2829_v49 = vpack.c.bf16 %v1176_v47, %v1173_v46  ;;  %v2893_v47 = vpack.c.bf16 %v1177_v45, %v1174_v44 }
 0x5df   :  { %2792 = vmatpush1.bf16.msra.mxu0 %v2791_v52  ;;  %v1179_v52 = vld [vmem:[#allocation2 + $0x350] sm:$0xff] }
 0x5e0   :  { %2794 = vmatprep.subr.bf16.mxu0 %v2793_v53  ;;  %v1182_v53 = vld [vmem:[#allocation2 + $0x368] sm:$0xff] }
 0x5e1   :  { %v2833_v55 = vpack.c.bf16 %v1182_v53, %v1179_v52  ;;  %v2897_v53 = vpack.c.bf16 %v1183_v51, %v1180_v50 }
 0x5e3   :  { %2796 = vmatpush1.bf16.msra.mxu0 %v2795_v58  ;;  %v1185_v58 = vld [vmem:[#allocation2 + $0x380] sm:$0xff] }
 0x5e4   :  { %2798 = vmatprep.subr.bf16.mxu0 %v2797_v59  ;;  %v1188_v59 = vld [vmem:[#allocation2 + $0x398] sm:$0xff] }
 0x5e5   :  { %v2837_v61 = vpack.c.bf16 %v1188_v59, %v1185_v58  ;;  %v2901_v59 = vpack.c.bf16 %v1189_v57, %v1186_v56  ;;  %v1212_v57 = vld [vmem:[#allocation2 + $0x458] sm:$0xff] }
 0x5e7   :  { %2800 = vmatpush1.bf16.msra.mxu0 %v2799_v2  ;;  %v3447_v2 = vsub.s32 0, %v3444_v63 }
 0x5e8   :  { %2802 = vmatprep.subr.bf16.mxu0 %v2801_v3  ;;  %v798_v3 = vld [vmem:[%s3722_s4 + $0x278] sm:$0xff] }
 0x5e9   :  { %v802_v4 = vrot.slane %v798_v3, %v3447_v2  ;;  %v1138_v3 = vld [vmem:[#allocation2 + $0x208] sm:$0xff] }
 0x5ea   :  { %v2903_v6 = vpack.c.bf16 %v1141_v5, %v1138_v3  ;;  %v911_v3 = vld [vmem:[#allocation2 + $0xd0] sm:$0xff] }
 0x5eb   :  { %2804 = vmatpush1.bf16.msra.mxu0 %v2803_v8 }
 0x5ec   :  { %2806 = vmatprep.subr.bf16.mxu0 %v2805_v9 }
 0x5ef   :  { %2808 = vmatpush1.bf16.msra.mxu0 %v2807_v14  ;;  %v2773_v14 = vpack.c.bf16 %v902_v12, %v899_v11  ;;  %v1195_v11 = vld [vmem:[#allocation2 + $0x3d0] sm:$0xff]  ;;  %v1190_v12 = vld [vmem:[#allocation2 + $0x3a8] sm:$0xff] }
 0x5f0   :  { %2810 = vmatprep.subr.bf16.mxu0 %v2809_v15  ;;  %v905_v15 = vld [vmem:[#allocation2 + $0xa0] sm:$0xff] }
 0x5f1   :  { %v2777_v17 = vpack.c.bf16 %v908_v16, %v905_v15  ;;  %v1144_v16 = vld [vmem:[#allocation2 + $0x238] sm:$0xff] }
 0x5f3   :  { %2812 = vmatpush1.bf16.msra.mxu0 %v2811_v20  ;;  %v2877_v20 = vpack.c.bf16 %v1153_v19, %v1150_v18  ;;  %v1197_v19 = vld [vmem:[#allocation2 + $0x3e0] sm:$0xff] }
 0x5f4   :  { %2814 = vmatprep.subr.bf16.mxu0 %v2813_v21  ;;  %v1105_v21 = vld [vmem:[#allocation2 + $0x100] sm:$0xff] }
 0x5f7   :  { %2816 = vmatpush1.bf16.msra.mxu0 %v2815_v26  ;;  %v1108_v26 = vld [vmem:[#allocation2 + $0x118] sm:$0xff] }
 0x5f8   :  { %2818 = vmatprep.subr.bf16.mxu0 %v2817_v27  ;;  %v1111_v27 = vld [vmem:[#allocation2 + $0x130] sm:$0xff] }
 0x5f9   :  { %v2883_v34 = vpack.c.bf16 %v1111_v27, %v1108_v26 }
 0x5fb   :  { %2820 = vmatpush1.bf16.msra.mxu0 %v2819_v36  ;;  %v1114_v36 = vld [vmem:[#allocation2 + $0x148] sm:$0xff] }
 0x5fc   :  { %2822 = vmatprep.subr.bf16.mxu0 %v2821_v37  ;;  %v1117_v37 = vld [vmem:[#allocation2 + $0x160] sm:$0xff] }
 0x5fd   :  { %v2887_v40 = vpack.c.bf16 %v1117_v37, %v1114_v36  ;;  %v1196_v36 = vld [vmem:[#allocation2 + $0x3d8] sm:$0xff]  ;;  %v1199_v37 = vld [vmem:[#allocation2 + $0x3f0] sm:$0xff] }
 0x5ff   :  { %2824 = vmatpush1.bf16.msra.mxu0 %v2823_v42  ;;  %v1120_v42 = vld [vmem:[#allocation2 + $0x178] sm:$0xff] }
 0x600   :  { %2826 = vmatprep.subr.bf16.mxu0 %v2825_v43  ;;  %v1123_v43 = vld [vmem:[#allocation2 + $0x190] sm:$0xff] }
 0x601   :  { %v2891_v46 = vpack.c.bf16 %v1123_v43, %v1120_v42  ;;  %v1207_v42 = vld [vmem:[#allocation2 + $0x430] sm:$0xff] }
 0x603   :  { %2828 = vmatpush1.bf16.msra.mxu0 %v2827_v48  ;;  %v1126_v48 = vld [vmem:[#allocation2 + $0x1a8] sm:$0xff] }
 0x604   :  { %2830 = vmatprep.subr.bf16.mxu0 %v2829_v49  ;;  %v1129_v49 = vld [vmem:[#allocation2 + $0x1c0] sm:$0xff] }
 0x605   :  { %v2895_v52 = vpack.c.bf16 %v1129_v49, %v1126_v48 }
 0x607   :  { %2832 = vmatpush1.bf16.msra.mxu0 %v2831_v54  ;;  %v1132_v54 = vld [vmem:[#allocation2 + $0x1d8] sm:$0xff] }
 0x608   :  { %2834 = vmatprep.subr.bf16.mxu0 %v2833_v55  ;;  %v1135_v55 = vld [vmem:[#allocation2 + $0x1f0] sm:$0xff] }
 0x609   :  { %v2899_v58 = vpack.c.bf16 %v1135_v55, %v1132_v54  ;;  %v1209_v54 = vld [vmem:[#allocation2 + $0x440] sm:$0xff] }
 0x60a   :  { %v2853_v5 = vpack.c.bf16 %v1212_v57, %v1209_v54  ;;  %v1235_v54 = vld [vmem:[#allocation2 + $0x510] sm:$0xff]  ;;  %v1240_v57 = vld [vmem:[#allocation2 + $0x538] sm:$0xff] }
 0x60b   :  { %2836 = vmatpush1.bf16.msra.mxu0 %v2835_v60  ;;  %v1184_v60 = vld [vmem:[#allocation2 + $0x378] sm:$0xff] }
 0x60c   :  { %2838 = vmatprep.subr.bf16.mxu0 %v2837_v61  ;;  %v1187_v61 = vld [vmem:[#allocation2 + $0x390] sm:$0xff] }
 0x6a9   :  { %v2556_v7 = vpop.f32.mrb[8].mxu0 }
 0x6aa   :  { %v876_v8 = vpop.f32.mrb[9].mxu0  ;;  %v882_v13 = vadd.f32 %v2556_v7, %v802_v4  ;;  %v1191_v7 = vld [vmem:[#allocation2 + $0x3b0] sm:$0xff] }
 0x6ab   :  { %v877_v9 = vadd.f32 %v876_v8, %v802_v4  ;;  %v2839_v4 = vpack.c.bf16 %v1187_v61, %v1184_v60  ;;  %v1194_v8 = vld [vmem:[#allocation2 + $0x3c8] sm:$0xff] }
 0x6ad   :  { %2283 = vmatmul.mubr.msk.f32.vlgmr.msra.gmra.mrb[12].mxu1 %vm783_vm3, %v877_v9  ;;  %2840 = vmatpush1.bf16.msra.mxu0 %v2839_v4 }
 0x6ae   :  { %2768 = vmatpush3.bf16.msra.mxu1 %v3439_v29  ;;  %1000 = vmatprep.mubr.f32.mxu1 %v3069_v30  ;;  %v1102_v29 = vld [vmem:[#allocation2 + $0xe8] sm:$0xff] }
 0x6af   :  { %2770 = vmatprep.subr.bf16.mxu1 %v2769_v10  ;;  %v2879_v24 = vpack.c.bf16 %v1105_v21, %v1102_v29  ;;  %v1198_v29 = vld [vmem:[#allocation2 + $0x3e8] sm:$0xff] }
 0x6b0   :  { %v2909_v23 = vpack.c.bf16 %v1201_v22, %v1198_v29  ;;  %v1224_v29 = vld [vmem:[#allocation2 + $0x4b8] sm:$0xff]  ;;  %v1225_v22 = vld [vmem:[#allocation2 + $0x4c0] sm:$0xff] }
 0x6b1   :  { %2284 = vmatmul.mubr.msk.f32.gmra.mrb[14].mxu1 %vm783_vm3, %v882_v13 }
 0x6b2   :  { %2772 = vmatpush3.bf16.msra.mxu1 %v2769_v10  ;;  %2573 = vmatprep.mubr.msk.f32.mxu1 %vm783_vm3, %v877_v9  ;;  %v1192_v9 = vld [vmem:[#allocation2 + $0x3b8] sm:$0xff]  ;;  %v2841_v10 = vpack.c.bf16 %v1194_v8, %v1191_v7  ;;  %v1211_v8 = vld [vmem:[#allocation2 + $0x450] sm:$0xff] }
 0x6b3   :  { %2774 = vmatprep.subr.bf16.mxu1 %v2773_v14  ;;  %v1208_v7 = vld [vmem:[#allocation2 + $0x438] sm:$0xff] }
 0x6b4   :  { %2842 = vmatprep.subr.bf16.mxu0 %v2841_v10 }
 0x6b6   :  { %2776 = vmatpush3.bf16.msra.mxu1 %v2773_v14  ;;  %v2905_v14 = vpack.c.bf16 %v1195_v11, %v1192_v9  ;;  %v1215_v9 = vld [vmem:[#allocation2 + $0x470] sm:$0xff]  ;;  %v1218_v11 = vld [vmem:[#allocation2 + $0x488] sm:$0xff] }
 0x6b7   :  { %2778 = vmatprep.subr.bf16.mxu1 %v2777_v17 }
 0x6ba   :  { %2780 = vmatpush3.bf16.msra.mxu1 %v2777_v17  ;;  %v1147_v17 = vld [vmem:[#allocation2 + $0x250] sm:$0xff] }
 0x6bb   :  { %2878 = vmatprep.subr.bf16.mxu1 %v2877_v20  ;;  %v2907_v18 = vpack.c.bf16 %v1147_v17, %v1144_v16  ;;  %v1200_v20 = vld [vmem:[#allocation2 + $0x3f8] sm:$0xff]  ;;  %v2857_v16 = vpack.c.bf16 %v1218_v11, %v1215_v9 }
 0x6bc   :  { %v2845_v21 = vpack.c.bf16 %v1200_v20, %v1197_v19  ;;  %v1217_v19 = vld [vmem:[#allocation2 + $0x480] sm:$0xff] }
 0x6bd   :  { %2574 = vmatmul.mubr.msk.f32.vlgmr.msra.gmra.mrb[16].mxu1 %vm783_vm3, %v882_v13  ;;  %v1193_v13 = vld [vmem:[#allocation2 + $0x3c0] sm:$0xff] }
 0x6be   :  { %2880 = vmatpush3.bf16.msra.mxu1 %v2879_v24  ;;  %v2843_v15 = vpack.c.bf16 %v1193_v13, %v1190_v12  ;;  %v909_v24 = vld [vmem:[#allocation2 + $0xc0] sm:$0xff]  ;;  %v1216_v12 = vld [vmem:[#allocation2 + $0x478] sm:$0xff]  ;;  %v1219_v13 = vld [vmem:[#allocation2 + $0x490] sm:$0xff] }
 0x6bf   :  { %2882 = vmatprep.subr.bf16.mxu1 %v2881_v25  ;;  %v910_v25 = vld [vmem:[#allocation2 + $0xc8] sm:$0xff]  ;;  %v915_v26 = vrot.slane %v909_v24, %v3447_v2  ;;  %v2921_v17 = vpack.c.bf16 %v1219_v13, %v1216_v12  ;;  %v1221_v20 = vld [vmem:[#allocation2 + $0x4a0] sm:$0xff] }
 0x6c0   :  { %2844 = vmatpush1.bf16.msra.mxu0 %v2843_v15  ;;  %v919_v27 = vrot.slane %v910_v25, %v3447_v2  ;;  %v3463_v15 = vrot.slane %v911_v3, %v3447_v2  ;;  %v1238_v3 = vld [vmem:[#allocation2 + $0x528] sm:$0xff] }
 0x6c1   :  { %2846 = vmatprep.subr.bf16.mxu0 %v2845_v21  ;;  %v1222_v21 = vld [vmem:[#allocation2 + $0x4a8] sm:$0xff] }
 0x6c2   :  { %2884 = vmatpush3.bf16.msra.mxu1 %v2883_v34 }
 0x6c3   :  { %2886 = vmatprep.subr.bf16.mxu1 %v2885_v35 }
 0x6c6   :  { %2888 = vmatpush3.bf16.msra.mxu1 %v2887_v40  ;;  %v1206_v40 = vld [vmem:[#allocation2 + $0x428] sm:$0xff] }
 0x6c7   :  { %2890 = vmatprep.subr.bf16.mxu1 %v2889_v41  ;;  %v1204_v41 = vld [vmem:[#allocation2 + $0x418] sm:$0xff]  ;;  %v2849_v50 = vpack.c.bf16 %v1206_v40, %v1203_v38  ;;  %v1231_v38 = vld [vmem:[#allocation2 + $0x4f0] sm:$0xff] }
 0x6c8   :  { %v2913_v51 = vpack.c.bf16 %v1207_v42, %v1204_v41 }
 0x6ca   :  { %2892 = vmatpush3.bf16.msra.mxu1 %v2891_v46 }
 0x6cb   :  { %2894 = vmatprep.subr.bf16.mxu1 %v2893_v47  ;;  %v2847_v47 = vpack.c.bf16 %v1199_v37, %v1196_v36  ;;  %v1230_v36 = vld [vmem:[#allocation2 + $0x4e8] sm:$0xff]  ;;  %v1228_v37 = vld [vmem:[#allocation2 + $0x4d8] sm:$0xff] }
 0x6ce   :  { %2896 = vmatpush3.bf16.msra.mxu1 %v2895_v52  ;;  %v1202_v52 = vld [vmem:[#allocation2 + $0x408] sm:$0xff] }
 0x6cf   :  { %2898 = vmatprep.subr.bf16.mxu1 %v2897_v53  ;;  %v1205_v53 = vld [vmem:[#allocation2 + $0x420] sm:$0xff] }
 0x6d0   :  { %v2851_v61 = vpack.c.bf16 %v1205_v53, %v1202_v52  ;;  %v1232_v53 = vld [vmem:[#allocation2 + $0x4f8] sm:$0xff] }
 0x6d2   :  { %2900 = vmatpush3.bf16.msra.mxu1 %v2899_v58  ;;  %v1210_v58 = vld [vmem:[#allocation2 + $0x448] sm:$0xff] }
 0x6d3   :  { %2902 = vmatprep.subr.bf16.mxu1 %v2901_v59  ;;  %v1213_v59 = vld [vmem:[#allocation2 + $0x460] sm:$0xff] }
 0x6d6   :  { %2904 = vmatpush3.bf16.msra.mxu1 %v2903_v6  ;;  %v2917_v6 = vpack.c.bf16 %v1213_v59, %v1210_v58  ;;  %v1243_v58 = vld [vmem:[#allocation2 + $0x550] sm:$0xff]  ;;  %v2871_v59 = vpack.c.bf16 %v1235_v54, %v1232_v53 }
 0x6d7   :  { %2906 = vmatprep.subr.bf16.mxu1 %v2905_v14  ;;  %v2855_v14 = vpack.c.bf16 %v1211_v8, %v1208_v7 }
 0x6da   :  { %2908 = vmatpush3.bf16.msra.mxu1 %v2907_v18  ;;  %v1214_v18 = vld [vmem:[#allocation2 + $0x468] sm:$0xff] }
 0x6db   :  { %2910 = vmatprep.subr.bf16.mxu1 %v2909_v23  ;;  %v2859_v25 = vpack.c.bf16 %v1217_v19, %v1214_v18 }
 0x780   :  { %v996_v28 = vpop.f32.mrb[12].mxu1 }
 0x781   :  { %v997_v33 = vadd.f32 %v996_v28, %v915_v26  ;;  %v998_v34 = vpop.f32.mrb[13].mxu1  ;;  %v2925_v28 = vpack.c.bf16 %v1225_v22, %v1222_v21 }
 0x782   :  { %v999_v35 = vadd.f32 %v998_v34, %v919_v27  ;;  %v1223_v34 = vld [vmem:[#allocation2 + $0x4b0] sm:$0xff] }
 0x783   :  { %v1088_v39 = vmul.f32 0.25, %v997_v33  ;;  %vm1082_vm5 = vcmp.gt.f32.partialorder %v997_v33, 0.0 }
 0x784   :  { %v1089_v43 = vmul.f32 0.25, %v999_v35  ;;  %v1002_v44 = vpop.f32.mrb[14].mxu1  ;;  %vm1083_vm6 = vcmp.gt.f32.partialorder %v999_v35, 0.0 }
 0x785   :  { %v1003_v45 = vadd.f32 %v1002_v44, %v915_v26  ;;  %v1004_v46 = vpop.f32.mrb[15].mxu1  ;;  %v1094_v56 = vsel %vm1082_vm5, %v997_v33, %v1088_v39  ;;  %v1220_v33 = vld [vmem:[#allocation2 + $0x498] sm:$0xff]  ;;  %v1226_v44 = vld [vmem:[#allocation2 + $0x4c8] sm:$0xff] }
 0x786   :  { %v1005_v48 = vadd.f32 %v1004_v46, %v919_v27  ;;  %v1095_v49 = vsel %vm1083_vm6, %v999_v35, %v1089_v43  ;;  %v2861_v27 = vpack.c.bf16 %v1224_v29, %v1221_v20  ;;  %v1227_v35 = vld [vmem:[#allocation2 + $0x4d0] sm:$0xff]  ;;  %v2863_v40 = vpack.c.bf16 %v1223_v34, %v1220_v33  ;;  %v1233_v46 = vld [vmem:[#allocation2 + $0x500] sm:$0xff] }
 0x787   :  { %v1091_v55 = vmul.f32 0.25, %v1003_v45  ;;  %1323 = vmatprep.mubr.f32.mxu0 %v1095_v49  ;;  %1475 = vmatprep.mubr.f32.mxu1 %v1095_v49  ;;  %vm1085_vm8 = vcmp.gt.f32.partialorder %v1003_v45, 0.0  ;;  %v2865_v42 = vpack.c.bf16 %v1230_v36, %v1227_v35  ;;  %v2929_v43 = vpack.c.bf16 %v1231_v38, %v1228_v37  ;;  %v1237_v49 = vld [vmem:[#allocation2 + $0x520] sm:$0xff] }
 0x788   :  { %v1092_v60 = vmul.f32 0.25, %v1005_v48  ;;  %1324 = vmatmul.mubr.f32.vlgmr.msra.gmra.mrb[10].mxu0 %v1094_v56  ;;  %1476 = vmatmul.mubr.f32.vlgmr.msra.gmra.mrb[18].mxu1 %v1094_v56  ;;  %vm1086_vm7 = vcmp.gt.f32.partialorder %v1005_v48, 0.0  ;;  %v1242_v56 = vld [vmem:[#allocation2 + $0x548] sm:$0xff] }
 0x789   :  { %2848 = vmatpush1.bf16.msra.mxu0 %v2847_v47  ;;  %2912 = vmatpush3.bf16.msra.mxu1 %v2909_v23  ;;  %v1097_v10 = vsel %vm1085_vm8, %v1003_v45, %v1091_v55  ;;  %v1229_v45 = vld [vmem:[#allocation2 + $0x4e0] sm:$0xff]  ;;  %v1236_v47 = vld [vmem:[#allocation2 + $0x518] sm:$0xff]  ;;  %v1239_v55 = vld [vmem:[#allocation2 + $0x530] sm:$0xff] }
 0x78a   :  { %v1098_v4 = vsel %vm1086_vm7, %v1005_v48, %v1092_v60  ;;  %2850 = vmatprep.subr.bf16.mxu0 %v2849_v50  ;;  %2914 = vmatprep.subr.bf16.mxu1 %v2913_v51  ;;  %v1234_v48 = vld [vmem:[#allocation2 + $0x508] sm:$0xff]  ;;  %v2867_v50 = vpack.c.bf16 %v1229_v45, %v1226_v44  ;;  %v2873_v60 = vpack.c.bf16 %v1242_v56, %v1239_v55 }
 0x78b   :  { %1329 = vmatprep.mubr.f32.mxu0 %v1098_v4  ;;  %1479 = vmatprep.mubr.f32.mxu1 %v1098_v4  ;;  %v2933_v52 = vpack.c.bf16 %v1237_v49, %v1234_v48  ;;  %v1241_v4 = vld [vmem:[#allocation2 + $0x540] sm:$0xff] }
 0x78c   :  { %1330 = vmatmul.mubr.f32.gmra.mrb[12].mxu0 %v1097_v10  ;;  %1480 = vmatmul.mubr.f32.gmra.mrb[20].mxu1 %v1097_v10 }
 0x78d   :  { %2852 = vmatpush1.bf16.msra.mxu0 %v2851_v61  ;;  %2916 = vmatpush3.bf16.msra.mxu1 %v2913_v51  ;;  %v2869_v51 = vpack.c.bf16 %v1236_v47, %v1233_v46  ;;  %v2937_v61 = vpack.c.bf16 %v1243_v58, %v1240_v57 }
 0x78e   :  { %2854 = vmatprep.subr.bf16.mxu0 %v2853_v5  ;;  %2918 = vmatprep.subr.bf16.mxu1 %v2917_v6 }
 0x78f   :  { %1399 = vmatprep.mubr.f32.mxu0 %v3069_v30 }
 0x790   :  { %v2575_v23 = vpop.f32.mrb[16].mxu1 }
 0x791   :  { %v1073_v24 = vpop.f32.mrb[17].mxu1  ;;  %2856 = vmatpush1.bf16.msra.mxu0 %v2855_v14  ;;  %2920 = vmatpush3.bf16.msra.mxu1 %v2917_v6  ;;  %v1079_v5 = vadd.f32 %v2575_v23, %v3463_v15  ;;  %v2875_v6 = vpack.c.bf16 %v1241_v4, %v1238_v3  ;;  %v1246_v14 = vld [vmem:[#allocation2 + $0x568] sm:$0xff] }
 0x792   :  { %v1074_v26 = vadd.f32 %v1073_v24, %v3463_v15  ;;  %2858 = vmatprep.subr.bf16.mxu0 %v2857_v16  ;;  %2922 = vmatprep.subr.bf16.mxu1 %v2921_v17  ;;  %v1258_v15 = vrot.slane %v1246_v14, %v3447_v2  ;;  %v1245_v16 = vld [vmem:[#allocation2 + $0x560] sm:$0xff] }
 0x793   :  { %v1093_v7 = vmul.f32 0.25, %v1079_v5  ;;  %vm1087_vm10 = vcmp.gt.f32.partialorder %v1079_v5, 0.0  ;;  %v1254_v18 = vrot.slane %v1245_v16, %v3447_v2 }
 0x794   :  { %v1090_v39 = vmul.f32 0.25, %v1074_v26  ;;  %vm1084_vm9 = vcmp.gt.f32.partialorder %v1074_v26, 0.0 }
 0x795   :  { %2860 = vmatpush1.bf16.msra.mxu0 %v2859_v25  ;;  %2924 = vmatpush3.bf16.msra.mxu1 %v2921_v17  ;;  %v1099_v8 = vsel %vm1087_vm10, %v1079_v5, %v1093_v7  ;;  %v1244_v17 = vld [vmem:[#allocation2 + $0x558] sm:$0xff] }
 0x796   :  { %v1096_v41 = vsel %vm1084_vm9, %v1074_v26, %v1090_v39  ;;  %2862 = vmatprep.subr.bf16.mxu0 %v2861_v27  ;;  %2926 = vmatprep.subr.bf16.mxu1 %v2925_v28  ;;  %v1250_v19 = vrot.slane %v1244_v17, %v3447_v2 }
 0x797   :  { %2608 = vmatprep.mubr.f32.mxu1 %v1096_v41 }
 0x799   :  { %2864 = vmatpush1.bf16.msra.mxu0 %v2863_v40  ;;  %2928 = vmatpush3.bf16.msra.mxu1 %v2925_v28 }
 0x79a   :  { %2866 = vmatprep.subr.bf16.mxu0 %v2865_v42  ;;  %2930 = vmatprep.subr.bf16.mxu1 %v2929_v43 }
 0x79d   :  { %2868 = vmatpush1.bf16.msra.mxu0 %v2867_v50  ;;  %2932 = vmatpush3.bf16.msra.mxu1 %v2929_v43 }
 0x79e   :  { %2870 = vmatprep.subr.bf16.mxu0 %v2869_v51  ;;  %2934 = vmatprep.subr.bf16.mxu1 %v2933_v52 }
 0x7a1   :  { %2872 = vmatpush1.bf16.msra.mxu0 %v2871_v59  ;;  %2936 = vmatpush3.bf16.msra.mxu1 %v2933_v52 }
 0x7a2   :  { %2874 = vmatprep.subr.bf16.mxu0 %v2873_v60  ;;  %2938 = vmatprep.subr.bf16.mxu1 %v2937_v61 }
 0x7a5   :  { %2876 = vmatpush1.bf16.msra.mxu0 %v2875_v6  ;;  %2940 = vmatpush3.bf16.msra.mxu1 %v2937_v61 }
 0x7a8   :  { %1400 = vmatmul.mubr.f32.vlgmr.msra.gmra.mrb[10].mxu0 %v1096_v41  ;;  %2609 = vmatmul.mubr.f32.vlgmr.msra.gmra.mrb[22].mxu1 %v1099_v8 }
 0x7a9   :  { %1405 = vmatprep.mubr.f32.mxu0 %v3069_v30 }
 0x7ac   :  { %1406 = vmatmul.mubr.f32.gmra.mrb[12].mxu0 %v1099_v8 }
 0x85b   :  { %v2449_v9 = vpop.f32.mrb[18].mxu1 }
 0x85c   :  { %v2450_v10 = vpop.f32.mrb[19].mxu1 }
 0x85f   :  { %v2452_v11 = vpop.f32.mrb[20].mxu1 }
 0x860   :  { %v2453_v12 = vpop.f32.mrb[21].mxu1 }
 0x861   :  { %v2454_v13 = vadd.f32 %v2453_v12, %v2452_v11 }
 0x863   :  { %v1482_v20 = vadd.f32 %v2454_v13, %v1258_v15 }
 0x87b   :  { %v1401_v29 = vpop.f32.mrb[10].mxu0  ;;  %v2610_v21 = vpop.f32.mrb[22].mxu1 }
 0x87c   :  { %v3472_v22 = vadd.f32 %v2610_v21, %v1482_v20  ;;  %v1403_v23 = vpop.f32.mrb[11].mxu0  ;;  %v1551_v24 = vpop.f32.mrb[23].mxu1  ;;  %v3476_v26 = vadd.f32 %v1401_v29, %v1250_v19 }
 0x87d   :  { %v3474_v25 = vadd.f32 %v1403_v23, %v1254_v18 }
 0x87e   :  { %v3480_v27 = vmul.f32 %v3472_v22, %v3472_v22  ;;  %v3486_v35 = vmul.f32 %v3476_v26, %v3476_v26 }
 0x87f   :  { %v1407_v28 = vpop.f32.mrb[12].mxu0  ;;  %v1572_v3 = vmul.f32 %v3474_v25, %v3474_v25 }
 0x880   :  { %1786 = vrot.lane.b32.xlu1 %v3480_v27, %s3068_s5  ;;  %v1408_v33 = vpop.f32.mrb[13].mxu0 }
 0x881   :  { %v2962_v34 = vadd.f32 %v1408_v33, %v1254_v18 }
 0x883   :  { %v1778_v36 = vmul.f32 %v2962_v34, %v2962_v34 }
 0x884   :  { %1565 = vrot.lane.b32.xlu1 %v3486_v35, %s3068_s5 }
 0x885   :  { %1780 = vrot.lane.b32.xlu0 %v1778_v36, %s3066_s0 }
 0x889   :  { %1561 = vrot.lane.b32.xlu0 %v3486_v35, %s3066_s0 }
 0x8f2   :  { %v3493_v39 = vpop.permute.xlu1 %1786 }
 0x8f6   :  { %v1566_v43 = vpop.permute.xlu1 %1565 }
 0x8f7   :  { %v1781_v37 = vpop.permute.xlu0 %1780 }
 0x8f8   :  { %v1783_v38 = vadd.f32 %v1781_v37, %v1778_v36 }
 0x8fa   :  { %v1789_v40 = vadd.f32 %v3493_v39, %v1783_v38 }
 0x8fb   :  { %v1562_v41 = vpop.permute.xlu0 %1561 }
 0x8fc   :  { %1791 = vrot.lane.b32.xlu0 %v1789_v40, %s3068_s5  ;;  %v1564_v42 = vadd.f32 %v1562_v41, %v3486_v35 }
 0x8fe   :  { %v1568_v44 = vadd.f32 %v1566_v43, %v1564_v42 }
 0x900   :  { %v1569_v45 = vsel %vm780_vm2, %v1568_v44, 0.0 }
 0x91b   :  { %1570 = vadd.xlane.f32.xlu0 %v1569_v45 }
 0x96e   :  { %v1792_v46 = vpop.permute.xlu0 %1791 }
 0x96f   :  { %v1794_v47 = vsel %vm780_vm2, %v1792_v46, 0.0 }
 0x970   :  { %1795 = vadd.xlane.f32.xlu1 %v1794_v47 }
 0x9a8   :  { %v1571_v48 = vpop.xlane.xlu0 %1570 }
 0x9a9   :  { %v1589_v49 = vmax.f32 %v1571_v48, 1e-24 }
 0x9ab   :  { %2982 = vrsqrt.f32 %v1589_v49 }
 0x9b5   :  { %v2983_v50 = vpop.eup %2982 }
 0x9b6   :  { %v3501_v51 = vmul.f32 %v2983_v50, %v3476_v26 }
 0x9b8   :  { %v1663_v52 = vsel %vm1662_vm11, %v3501_v51, 0.0  ;;  %v1630_v36 = vsel %vm1629_vm13, %v3501_v51, 0.0 }
 0x9b9   :  { %v1664_v53 = vrot.slane %v1663_v52, 4  ;;  %v1631_v38 = vrot.slane %v1630_v36, 4 }
 0x9bb   :  { %v1665_v54 = vadd.f32 %v1664_v53, %v1663_v52  ;;  %v1632_v41 = vadd.f32 %v1631_v38, %v1630_v36 }
 0x9bd   :  { %v1666_v55 = vrot.slane %v1665_v54, 2  ;;  %v1633_v43 = vrot.slane %v1632_v41, 2 }
 0x9bf   :  { %v1667_v56 = vadd.f32 %v1666_v55, %v1665_v54  ;;  %v1634_v45 = vadd.f32 %v1633_v43, %v1632_v41 }
 0x9c1   :  { %v1668_v57 = vrot.slane %v1667_v56, 1  ;;  %v1635_v47 = vrot.slane %v1634_v45, 1 }
 0x9c3   :  { %v1669_v58 = vadd.f32 %v1668_v57, %v1667_v56  ;;  %v1636_v49 = vadd.f32 %v1635_v47, %v1634_v45 }
 0x9c5   :  { %v1670_v59 = vmul.f32 0.125, %v1669_v58  ;;  %v1637_v52 = vmul.f32 0.125, %v1636_v49 }
 0x9c7   :  { %v1671_v60 = vadd.f32 %v1670_v59, %v3501_v51  ;;  %v1638_v54 = vadd.f32 %v1637_v52, %v3501_v51 }
 0x9c9   :  { %v1672_v61 = vsel %vm1662_vm11, %v1671_v60, -inf  ;;  %v1639_v56 = vsel %vm1629_vm13, %v1638_v54, -inf }
 0x9ca   :  { %1673 = vmax.xlane.f32.xlu1 %v1672_v61 }
 0x9db   :  { %1797 = vrot.lane.b32.xlu1 %v3480_v27, %s3066_s0 }
 0x9df   :  { %1578 = vrot.lane.b32.xlu1 %v1572_v3, %s3068_s5 }
 0x9fd   :  { %v1796_v4 = vpop.xlane.xlu1 %1795 }
 0x9fe   :  { %v1809_v5 = vmax.f32 %v1796_v4, 1e-24 }
 0xa00   :  { %2984 = vrsqrt.f32 %v1809_v5 }
 0xa0a   :  { %v2985_v6 = vpop.eup %2984 }
 0xa0b   :  { %v1813_v7 = vmul.f32 %v2985_v6, %v2962_v34  ;;  %v1814_v37 = vmul.f32 %v2985_v6, %v3472_v22 }
 0xa0d   :  { %v1852_v8 = vsel %vm1699_vm12, %v1813_v7, 0.0  ;;  %v1816_v9 = vsel %vm1662_vm11, %v1813_v7, 0.0  ;;  %v1888_v40 = vsel %vm780_vm2, %v1814_v37, 0.0 }
 0xa0e   :  { %v1853_v10 = vrot.slane %v1852_v8, 4  ;;  %v1817_v11 = vrot.slane %v1816_v9, 4  ;;  %v1889_v42 = vrot.slane %v1888_v40, 4 }
 0xa10   :  { %v1854_v12 = vadd.f32 %v1853_v10, %v1852_v8  ;;  %v1818_v13 = vadd.f32 %v1817_v11, %v1816_v9  ;;  %v1890_v44 = vadd.f32 %v1889_v42, %v1888_v40 }
 0xa12   :  { %v1855_v14 = vrot.slane %v1854_v12, 2  ;;  %v1819_v15 = vrot.slane %v1818_v13, 2  ;;  %v1891_v46 = vrot.slane %v1890_v44, 2 }
 0xa14   :  { %v1856_v16 = vadd.f32 %v1855_v14, %v1854_v12  ;;  %v1820_v17 = vadd.f32 %v1819_v15, %v1818_v13  ;;  %v1892_v48 = vadd.f32 %v1891_v46, %v1890_v44  ;;  %v1596_v14 = vsel %vm780_vm2, %v3501_v51, 0.0 }
 0xa15   :  { %v1597_v15 = vrot.slane %v1596_v14, 4 }
 0xa16   :  { %v1857_v18 = vrot.slane %v1856_v16, 1  ;;  %v1821_v19 = vrot.slane %v1820_v17, 1  ;;  %v1893_v50 = vrot.slane %v1892_v48, 1 }
 0xa18   :  { %v1858_v20 = vadd.f32 %v1857_v18, %v1856_v16  ;;  %v1822_v29 = vadd.f32 %v1821_v19, %v1820_v17  ;;  %v1894_v53 = vadd.f32 %v1893_v50, %v1892_v48 }
 0xa1a   :  { %v1859_v21 = vmul.f32 0.125, %v1858_v20  ;;  %v1823_v23 = vmul.f32 0.125, %v1822_v29  ;;  %v1895_v55 = vmul.f32 0.125, %v1894_v53 }
 0xa1c   :  { %v1860_v24 = vadd.f32 %v1859_v21, %v1813_v7  ;;  %v3514_v28 = vadd.f32 %v1823_v23, %v1813_v7  ;;  %v1896_v57 = vadd.f32 %v1895_v55, %v1814_v37 }
 0xa1e   :  { %v1861_v33 = vsel %vm1699_vm12, %v1860_v24, -inf  ;;  %v1825_v34 = vsel %vm1662_vm11, %v3514_v28, -inf  ;;  %v1897_v59 = vsel %vm780_vm2, %v1896_v57, -inf }
 0xa1f   :  { %1862 = vmax.xlane.f32.xlu0 %v1861_v33  ;;  %1826 = vmax.xlane.f32.xlu1 %v1825_v34 }
 0xa35   :  { %1574 = vrot.lane.b32.xlu0 %v1572_v3, %s3066_s0 }
 0xa54   :  { %1640 = vmax.xlane.f32.xlu0 %v1639_v56 }
 0xa57   :  { %v1674_v58 = vpop.xlane.xlu1 %1673 }
 0xa58   :  { %v1675_v61 = vsub.f32 %v1671_v60, %v1674_v58  ;;  %1898 = vmax.xlane.f32.xlu0 %v1897_v59 }
 0xa5a   :  { %v1676_v3 = vmul.f32 1.442695, %v1675_v61 }
 0xa5b   :  { %v1798_v5 = vpop.permute.xlu1 %1797 }
 0xa5c   :  { %2986 = vpow2.f32 %v1676_v3  ;;  %v1800_v12 = vadd.f32 %v1798_v5, %v3480_v27 }
 0xa5e   :  { %v1801_v13 = vadd.f32 %v1800_v12, %v3493_v39 }
 0xa5f   :  { %v1579_v11 = vpop.permute.xlu1 %1578 }
 0xa66   :  { %v3527_v4 = vpop.eup %2986 }
 0xa67   :  { %1679 = vrot.lane.b32.xlu1 %v3527_v4, %s3068_s5 }
 0xaac   :  { %v1863_v6 = vpop.xlane.xlu0 %1862  ;;  %v1827_v39 = vpop.xlane.xlu1 %1826 }
 0xaad   :  { %v1864_v7 = vsub.f32 %v1860_v24, %v1863_v6  ;;  %v1828_v33 = vsub.f32 %v3514_v28, %v1827_v39 }
 0xaaf   :  { %v1865_v8 = vmul.f32 1.442695, %v1864_v7  ;;  %v1829_v38 = vmul.f32 1.442695, %v1828_v33 }
 0xab0   :  { %v1575_v9 = vpop.permute.xlu0 %1574 }
 0xab1   :  { %v1577_v10 = vadd.f32 %v1575_v9, %v3486_v35  ;;  %2988 = vpow2.f32 %v1865_v8  ;;  %v1598_v35 = vadd.f32 %v1597_v15, %v1596_v14 }
 0xab3   :  { %v1581_v60 = vadd.f32 %v1579_v11, %v1577_v10  ;;  %v1599_v17 = vrot.slane %v1598_v35, 2 }
 0xab5   :  { %1583 = vrot.lane.b32.xlu1 %v1581_v60, %s3067_s1  ;;  %v1600_v18 = vadd.f32 %v1599_v17, %v1598_v35 }
 0xab7   :  { %v1601_v27 = vrot.slane %v1600_v18, 1 }
 0xab9   :  { %1803 = vrot.lane.b32.xlu1 %v1801_v13, %s3066_s0  ;;  %v1602_v19 = vadd.f32 %v1601_v27, %v1600_v18 }
 0xabb   :  { %v3538_v16 = vpop.eup %2988  ;;  %v1604_v20 = vmul.f32 0.125, %v1602_v19 }
 0xabc   :  { %1868 = vrot.lane.b32.xlu0 %v3538_v16, %s3067_s1 }
 0xabd   :  { %v1605_v29 = vadd.f32 %v1604_v20, %v3501_v51 }
 0xabf   :  { %v1606_v21 = vsel %vm780_vm2, %v1605_v29, -inf }
 0xad9   :  { %v1680_v23 = vpop.permute.xlu1 %1679 }
 0xada   :  { %v1682_v24 = vsel %vm780_vm2, %v1680_v23, 0.0 }
 0xadb   :  { %1607 = vmax.xlane.f32.xlu0 %v1606_v21 }
 0xadf   :  { %1683 = vadd.xlane.f32.xlu0 %v1682_v24 }
 0xae1   :  { %v1641_v34 = vpop.xlane.xlu0 %1640 }
 0xae2   :  { %v1642_v36 = vsub.f32 %v1638_v54, %v1641_v34 }
 0xae4   :  { %v1643_v37 = vmul.f32 1.442695, %v1642_v36 }
 0xae5   :  { %v1899_v40 = vpop.xlane.xlu0 %1898 }
 0xae6   :  { %2990 = vpow2.f32 %v1643_v37  ;;  %v1900_v41 = vsub.f32 %v1896_v57, %v1899_v40 }
 0xae7   :  { %2992 = vpow2.f32 %v1829_v38 }
 0xae8   :  { %v1901_v42 = vmul.f32 1.442695, %v1900_v41 }
 0xaea   :  { %2994 = vpow2.f32 %v1901_v42 }
 0xaf0   :  { %v3546_v51 = vpop.eup %2990 }
 0xaf1   :  { %1646 = vrot.lane.b32.xlu1 %v3546_v51, %s3066_s0  ;;  %v3550_v43 = vpop.eup %2992 }
 0xaf4   :  { %v3552_v44 = vpop.eup %2994 }
 0xaf5   :  { %1832 = vrot.lane.b32.xlu1 %v3550_v43, %s3068_s5  ;;  %v1903_v28 = vsel %vm780_vm2, %v3552_v44, 0.0 }
 0xaf6   :  { %1904 = vadd.xlane.f32.xlu0 %v1903_v28 }
 0xb27   :  { %v1584_v45 = vpop.permute.xlu1 %1583 }
 0xb28   :  { %v1586_v46 = vsel %vm780_vm2, %v1584_v45, 0.0 }
 0xb29   :  { %1587 = vadd.xlane.f32.xlu0 %v1586_v46 }
 0xb2b   :  { %v1804_v47 = vpop.permute.xlu1 %1803 }
 0xb2c   :  { %v1806_v48 = vsel %vm780_vm2, %v1804_v47, 0.0 }
 0xb2d   :  { %1807 = vadd.xlane.f32.xlu0 %v1806_v48 }
 0xb2e   :  { %v1869_v49 = vpop.permute.xlu0 %1868 }
 0xb2f   :  { %v1871_v50 = vsel %vm780_vm2, %v1869_v49, 0.0 }
 0xb30   :  { %1872 = vadd.xlane.f32.xlu1 %v1871_v50 }
 0xb63   :  { %v1647_v52 = vpop.permute.xlu1 %1646 }
 0xb64   :  { %v1649_v53 = vsel %vm780_vm2, %v1647_v52, 0.0 }
 0xb65   :  { %1650 = vadd.xlane.f32.xlu1 %v1649_v53 }
 0xb67   :  { %v1833_v59 = vpop.permute.xlu1 %1832 }
 0xb68   :  { %v1608_v54 = vpop.xlane.xlu0 %1607  ;;  %v1835_v61 = vsel %vm780_vm2, %v1833_v59, 0.0 }
 0xb69   :  { %v1609_v55 = vsub.f32 %v1605_v29, %v1608_v54 }
 0xb6b   :  { %v1610_v56 = vmul.f32 1.442695, %v1609_v55 }
 0xb6c   :  { %v1684_v3 = vpop.xlane.xlu0 %1683 }
 0xb6d   :  { %2996 = vpow2.f32 %v1610_v56 }
 0xb6e   :  { %2998 = vrcp.f32 %v1684_v3 }
 0xb77   :  { %v3562_v57 = vpop.eup %2996 }
 0xb78   :  { %v1612_v58 = vsel %vm780_vm2, %v3562_v57, 0.0  ;;  %v2999_v5 = vpop.eup %2998 }
 0xb79   :  { %1613 = vadd.xlane.f32.xlu0 %v1612_v58  ;;  %v1686_v6 = vmul.f32 %v2999_v5, %v3527_v4 }
 0xb7d   :  { %1836 = vadd.xlane.f32.xlu0 %v1835_v61 }
 0xb83   :  { %v1905_v7 = vpop.xlane.xlu0 %1904 }
 0xb93   :  { %1688 = vrot.lane.b32.xlu0 %v1686_v6, %s3066_s0 }
 0xbb6   :  { %v1588_v8 = vpop.xlane.xlu0 %1587 }
 0xbb7   :  { %v1591_v9 = vmax.f32 %v1588_v8, 1e-24 }
 0xbb9   :  { %3000 = vrsqrt.f32 %v1591_v9 }
 0xbba   :  { %v1808_v10 = vpop.xlane.xlu0 %1807 }
 0xbbb   :  { %v1811_v11 = vmax.f32 %v1808_v10, 1e-24 }
 0xbbd   :  { %3002 = vrsqrt.f32 %v1811_v11  ;;  %v1873_v12 = vpop.xlane.xlu1 %1872 }
 0xbbe   :  { %3004 = vrcp.f32 %v1873_v12 }
 0xbbf   :  { %3006 = vrcp.f32 %v1905_v7 }
 0xbc3   :  { %v3569_v60 = vpop.eup %3000 }
 0xbc4   :  { %v1595_v13 = vmul.f32 %v3569_v60, %v3474_v25 }
 0xbc6   :  { %v1709_v14 = vsel %vm780_vm2, %v1595_v13, 0.0  ;;  %v1718_v4 = vsel %vm1629_vm13, %v1595_v13, 0.0 }
 0xbc7   :  { %v3003_v15 = vpop.eup %3002  ;;  %v1710_v35 = vrot.slane %v1709_v14, 4  ;;  %v1719_v17 = vrot.slane %v1718_v4, 4 }
 0xbc8   :  { %v3576_v18 = vmul.f32 %v3003_v15, %v3472_v22  ;;  %v3005_v27 = vpop.eup %3004 }
 0xbc9   :  { %v1711_v19 = vadd.f32 %v1710_v35, %v1709_v14  ;;  %v1720_v20 = vadd.f32 %v1719_v17, %v1718_v4  ;;  %v1875_v29 = vmul.f32 %v3005_v27, %v3538_v16  ;;  %v3007_v21 = vpop.eup %3006 }
 0xbca   :  { %v1929_v39 = vsel %vm1662_vm11, %v3576_v18, 0.0  ;;  %v1938_v25 = vsel %vm1699_vm12, %v3576_v18, 0.0  ;;  %v1907_v40 = vmul.f32 %v3007_v21, %v3552_v44  ;;  %v1920_v17 = vsel %vm1629_vm13, %v3576_v18, 0.0 }
 0xbcb   :  { %v1712_v23 = vrot.slane %v1711_v19, 2  ;;  %v1721_v24 = vrot.slane %v1720_v20, 2  ;;  %v1930_v33 = vrot.slane %v1929_v39, 4  ;;  %v1939_v34 = vrot.slane %v1938_v25, 4  ;;  %1877 = vrot.lane.b32.xlu1 %v1875_v29, %s3068_s5 }
 0xbcd   :  { %v1713_v22 = vadd.f32 %v1712_v23, %v1711_v19  ;;  %v1722_v36 = vadd.f32 %v1721_v24, %v1720_v20  ;;  %v1931_v37 = vadd.f32 %v1930_v33, %v1929_v39  ;;  %v1940_v38 = vadd.f32 %v1939_v34, %v1938_v25 }
 0xbcf   :  { %v1714_v16 = vrot.slane %v1713_v22, 1  ;;  %v1723_v41 = vrot.slane %v1722_v36, 1  ;;  %v1932_v42 = vrot.slane %v1931_v37, 2  ;;  %v1941_v28 = vrot.slane %v1940_v38, 2  ;;  %1909 = vrot.lane.b32.xlu1 %v1907_v40, %s3067_s1 }
 0xbd1   :  { %v1715_v45 = vadd.f32 %v1714_v16, %v1713_v22  ;;  %v1724_v46 = vadd.f32 %v1723_v41, %v1722_v36  ;;  %v1933_v47 = vadd.f32 %v1932_v42, %v1931_v37  ;;  %v1942_v48 = vadd.f32 %v1941_v28, %v1940_v38 }
 0xbd3   :  { %v1716_v49 = vmul.f32 0.125, %v1715_v45  ;;  %v1934_v50 = vrot.slane %v1933_v47, 1  ;;  %v1943_v52 = vrot.slane %v1942_v48, 1  ;;  %v1725_v54 = vmul.f32 0.125, %v1724_v46 }
 0xbd5   :  { %v3586_v53 = vadd.f32 %v1716_v49, %v1595_v13  ;;  %v1935_v55 = vadd.f32 %v1934_v50, %v1933_v47  ;;  %v1944_v56 = vadd.f32 %v1943_v52, %v1942_v48  ;;  %v3590_v58 = vadd.f32 %v1725_v54, %v1595_v13 }
 0xbd7   :  { %1728 = vrot.lane.b32.xlu1 %v3586_v53, %s3066_s0  ;;  %v1936_v44 = vmul.f32 0.125, %v1935_v55  ;;  %v1945_v61 = vmul.f32 0.125, %v1944_v56 }
 0xbd9   :  { %v3593_v59 = vadd.f32 %v1936_v44, %v3576_v18  ;;  %v3600_v3 = vadd.f32 %v1945_v61, %v3576_v18 }
 0xbdb   :  { %1733 = vrot.lane.b32.xlu1 %v3590_v58, %s3068_s5  ;;  %1948 = vrot.lane.b32.xlu0 %v3593_v59, %s3066_s0 }
 0xbdf   :  { %1953 = vrot.lane.b32.xlu0 %v3600_v3, %s3068_s5 }
 0xbf2   :  { %v1651_v5 = vpop.xlane.xlu1 %1650 }
 0xbf3   :  { %3008 = vrcp.f32 %v1651_v5 }
 0xbfd   :  { %v3009_v8 = vpop.eup %3008 }
 0xbfe   :  { %v1653_v11 = vmul.f32 %v3009_v8, %v3546_v51 }
 0xc00   :  { %v1654_v13 = vmul.f32 %v1653_v11, %v3365_v1 }
 0xc06   :  { %v1614_v6 = vpop.xlane.xlu0 %1613 }
 0xc07   :  { %3010 = vrcp.f32 %v1614_v6 }
 0xc0a   :  { %v1837_v7 = vpop.xlane.xlu0 %1836 }
 0xc0b   :  { %3012 = vrcp.f32 %v1837_v7 }
 0xc0e   :  { %v1689_v4 = vpop.permute.xlu0 %1688 }
 0xc0f   :  { %v1691_v15 = vmul.f32 %v1689_v4, %v3365_v1 }
 0xc11   :  { %v3011_v9 = vpop.eup %3010 }
 0xc12   :  { %v1616_v10 = vmul.f32 %v3011_v9, %v3562_v57  ;;  %v1594_v57 = vmul.f32 %v3569_v60, %v3476_v26 }
 0xc14   :  { %1618 = vrot.lane.b32.xlu1 %v1616_v10, %s3067_s1  ;;  %v1700_v51 = vsel %vm1699_vm12, %v1594_v57, 0.0 }
 0xc15   :  { %v3013_v12 = vpop.eup %3012  ;;  %v1701_v35 = vrot.slane %v1700_v51, 4 }
 0xc16   :  { %v1839_v14 = vmul.f32 %v3013_v12, %v3550_v43  ;;  %v1921_v43 = vrot.slane %v1920_v17, 4 }
 0xc17   :  { %v1702_v27 = vadd.f32 %v1701_v35, %v1700_v51 }
 0xc18   :  { %1656 = vrot.lane.b32.xlu1 %v1654_v13, %s3066_s0  ;;  %1841 = vrot.lane.b32.xlu0 %v1839_v14, %s3066_s0  ;;  %v1922_v20 = vadd.f32 %v1921_v43, %v1920_v17 }
 0xc19   :  { %v1703_v19 = vrot.slane %v1702_v27, 2 }
 0xc1a   :  { %v1923_v39 = vrot.slane %v1922_v20, 2 }
 0xc1b   :  { %v1704_v29 = vadd.f32 %v1703_v19, %v1702_v27 }
 0xc1c   :  { %1693 = vrot.lane.b32.xlu1 %v1691_v15, %s3066_s0  ;;  %v1924_v23 = vadd.f32 %v1923_v39, %v1922_v20 }
 0xc1d   :  { %v1705_v21 = vrot.slane %v1704_v29, 1 }
 0xc1e   :  { %v1925_v33 = vrot.slane %v1924_v23, 1 }
 0xc1f   :  { %v1706_v60 = vadd.f32 %v1705_v21, %v1704_v29 }
 0xc20   :  { %v1926_v36 = vadd.f32 %v1925_v33, %v1924_v23 }
 0xc21   :  { %v1707_v22 = vmul.f32 0.125, %v1706_v60 }
 0xc22   :  { %v1927_v40 = vmul.f32 0.125, %v1926_v36 }
 0xc23   :  { %v3622_v38 = vadd.f32 %v1707_v22, %v1594_v57 }
 0xc24   :  { %v1928_v45 = vadd.f32 %v1927_v40, %v3576_v18 }
 0xc3d   :  { %v1878_v25 = vpop.permute.xlu1 %1877 }
 0xc3e   :  { %v1880_v24 = vmul.f32 %v1878_v25, %v3363_v0 }
 0xc40   :  { %1882 = vrot.lane.b32.xlu0 %v1880_v24, %s3066_s0 }
 0xc41   :  { %v1910_v26 = vpop.permute.xlu1 %1909 }
 0xc42   :  { %v1912_v34 = vmul.f32 %v1910_v26, %v3363_v0 }
 0xc44   :  { %1914 = vrot.lane.b32.xlu0 %v1912_v34, %s3066_s0 }
 0xc49   :  { %v1729_v37 = vpop.permute.xlu1 %1728 }
 0xc4a   :  { %v1731_v16 = vmax.f32 %v3622_v38, %v1729_v37 }
 0xc4d   :  { %v1734_v41 = vpop.permute.xlu1 %1733  ;;  %v1949_v42 = vpop.permute.xlu0 %1948 }
 0xc4e   :  { %v3625_v28 = vmax.f32 %v1731_v16, %v1734_v41  ;;  %v1951_v47 = vmax.f32 %v1928_v45, %v1949_v42 }
 0xc50   :  { %v1737_v46 = vsub.f32 %v3622_v38, %v3625_v28  ;;  %1741 = vrot.lane.b32.xlu1 %v3625_v28, %s3067_s1 }
 0xc51   :  { %v1954_v48 = vpop.permute.xlu0 %1953 }
 0xc52   :  { %v1956_v49 = vmax.f32 %v1951_v47, %v1954_v48  ;;  %v1738_v16 = vmul.f32 1.442695, %v1737_v46 }
 0xc54   :  { %v1957_v50 = vsub.f32 %v1928_v45, %v1956_v49  ;;  %1747 = vrot.lane.b32.xlu1 %v3625_v28, %s3068_s5  ;;  %1961 = vrot.lane.b32.xlu0 %v1956_v49, %s3067_s1 }
 0xc56   :  { %v1958_v21 = vmul.f32 1.442695, %v1957_v50 }
 0xc58   :  { %1967 = vrot.lane.b32.xlu0 %v1956_v49, %s3068_s5 }
 0xc86   :  { %v1619_v52 = vpop.permute.xlu1 %1618 }
 0xc87   :  { %v1621_v18 = vmul.f32 %v1619_v52, %v3365_v1 }
 0xc89   :  { %1623 = vrot.lane.b32.xlu1 %v1621_v18, %s3066_s0 }
 0xc8a   :  { %v1657_v54 = vpop.permute.xlu1 %1656  ;;  %v1842_v55 = vpop.permute.xlu0 %1841 }
 0xc8b   :  { %v1844_v56 = vmul.f32 %v1842_v55, %v3363_v0  ;;  %v1659_v44 = vsel %vm780_vm2, %v1657_v54, 0.0 }
 0xc8c   :  { %1660 = vadd.xlane.f32.xlu0 %v1659_v44 }
 0xc8d   :  { %1846 = vrot.lane.b32.xlu1 %v1844_v56, %s3066_s0 }
 0xc8e   :  { %v1694_v61 = vpop.permute.xlu1 %1693 }
 0xc8f   :  { %v1696_v5 = vsel %vm780_vm2, %v1694_v61, 0.0 }
 0xc90   :  { %1697 = vadd.xlane.f32.xlu0 %v1696_v5 }
 0xcb2   :  { %v1883_v6 = vpop.permute.xlu0 %1882 }
 0xcb3   :  { %v1885_v17 = vsel %vm780_vm2, %v1883_v6, 0.0 }
 0xcb6   :  { %v1915_v7 = vpop.permute.xlu0 %1914 }
 0xcb7   :  { %v1917_v8 = vsel %vm780_vm2, %v1915_v7, 0.0 }
 0xcb8   :  { %1918 = vadd.xlane.f32.xlu0 %v1917_v8 }
 0xcc2   :  { %v1742_v9 = vpop.permute.xlu1 %1741 }
 0xcc6   :  { %v1748_v10 = vpop.permute.xlu1 %1747  ;;  %v1962_v11 = vpop.permute.xlu0 %1961 }
 0xcc7   :  { %v1964_v12 = vsub.f32 %v3593_v59, %v1962_v11  ;;  %v1750_v13 = vsub.f32 %v3590_v58, %v1748_v10  ;;  %v1744_v59 = vsub.f32 %v3586_v53, %v1742_v9 }
 0xcc9   :  { %v1965_v14 = vmul.f32 1.442695, %v1964_v12  ;;  %v1751_v4 = vmul.f32 1.442695, %v1750_v13  ;;  %v1745_v27 = vmul.f32 1.442695, %v1744_v59 }
 0xcca   :  { %v1968_v58 = vpop.permute.xlu0 %1967  ;;  %v2024_v12 = vld [vmem:[%s3722_s4 + $0x280] sm:$0xff]  ;;  %v2025_v13 = vld [vmem:[%s3722_s4 + $0x288] sm:$0xff] }
 0xccb   :  { %3014 = vpow2.f32 %v1965_v14  ;;  %v1970_v43 = vsub.f32 %v3600_v3, %v1968_v58  ;;  %v2026_v14 = vld [vmem:[%s3722_s4 + $0x290] sm:$0xff] }
 0xccc   :  { %3016 = vpow2.f32 %v1751_v4  ;;  %v2941_v4 = vpack.c.bf16 %v2025_v13, %v2024_v12  ;;  %v2030_v58 = vld [vmem:[%s3722_s4 + $0x2b0] sm:$0xff] }
 0xccd   :  { %3018 = vpow2.f32 %v1745_v27  ;;  %v1971_v19 = vmul.f32 1.442695, %v1970_v43  ;;  %v2031_v27 = vld [vmem:[%s3722_s4 + $0x2b8] sm:$0xff] }
 0xcce   :  { %2942 = vmatprep.subr.bf16.mxu1 %v2941_v4 }
 0xccf   :  { %3020 = vpow2.f32 %v1971_v19  ;;  %2944 = vmatpush3.bf16.msra.mxu1 %v2941_v4  ;;  %v2953_v19 = vpack.c.bf16 %v2031_v27, %v2030_v58 }
 0xcd0   :  { %3022 = vpow2.f32 %v1958_v21 }
 0xcd1   :  { %3024 = vpow2.f32 %v1738_v16 }
 0xcd5   :  { %v3015_v15 = vpop.eup %3014 }
 0xcd6   :  { %1987 = vrot.lane.b32.xlu1 %v3015_v15, %s3066_s0  ;;  %v3017_v57 = vpop.eup %3016 }
 0xcd7   :  { %v3019_v20 = vpop.eup %3018 }
 0xcd9   :  { %v3021_v29 = vpop.eup %3020 }
 0xcda   :  { %1772 = vrot.lane.b32.xlu1 %v3017_v57, %s3068_s5  ;;  %v3023_v3 = vpop.eup %3022 }
 0xcdb   :  { %v3025_v45 = vpop.eup %3024 }
 0xcfb   :  { %v1624_v51 = vpop.permute.xlu1 %1623 }
 0xcfc   :  { %v1626_v35 = vsel %vm780_vm2, %v1624_v51, 0.0  ;;  %v2029_v51 = vld [vmem:[%s3722_s4 + $0x2a8] sm:$0xff] }
 0xcfd   :  { %1627 = vadd.xlane.f32.xlu0 %v1626_v35 }
 0xcfe   :  { %1886 = vadd.xlane.f32.xlu1 %v1885_v17 }
 0xcff   :  { %v1847_v23 = vpop.permute.xlu1 %1846 }
 0xd00   :  { %v1849_v53 = vsel %vm780_vm2, %v1847_v23, 0.0 }
 0xd13   :  { %1767 = vrot.lane.b32.xlu0 %v3019_v20, %s3066_s0 }
 0xd17   :  { %1992 = vrot.lane.b32.xlu0 %v3021_v29, %s3068_s5 }
 0xd19   :  { %v1661_v39 = vpop.xlane.xlu0 %1660 }
 0xd1a   :  { %v1754_v25 = vmul.f32 %v3019_v20, %v1661_v39  ;;  %v3070_v20 = vmov 1   ;;  %v2010_v39 = vmul.f32 0.5, %v3386_v31  ;;  %v3072_v31 = vmov 0.0|0.0  }
 0xd1b   :  { %2980 = vset.pattern.permute.xlu0 %v3070_v20 }
 0xd1c   :  { %1756 = vrot.lane.b32.xlu1 %v1754_v25, %s3066_s0 }
 0xd1d   :  { %v1698_v60 = vpop.xlane.xlu0 %1697 }
 0xd1e   :  { %v1760_v33 = vmul.f32 %v3017_v57, %v1698_v60  ;;  %v2028_v57 = vld [vmem:[%s3722_s4 + $0x2a0] sm:$0xff] }
 0xd1f   :  { %v2949_v17 = vpack.c.bf16 %v2029_v51, %v2028_v57 }
 0xd40   :  { %1850 = vadd.xlane.f32.xlu1 %v1849_v53  ;;  %v1998_v53 = vmul.f32 0.5, %v3388_v32  ;;  %v2128_v32 = vld [vmem:[%s3722_s4 + $0x2c0] sm:$0xff] }
 0xd45   :  { %v1919_v37 = vpop.xlane.xlu0 %1918 }
 0xd46   :  { %v1980_v40 = vmul.f32 %v3021_v29, %v1919_v37  ;;  %v2113_v29 = vld [vmem:[%s3720_s2] sm:$0xff] }
 0xd47   :  { %v2120_v23 = vadd.s32 8, %v2113_v29 }
 0xd48   :  { %v1988_v24 = vpop.permute.xlu1 %1987 }
 0xd49   :  { %v1990_v26 = vadd.f32 %v3023_v3, %v1988_v24 }
 0xd4c   :  { %v1773_v34 = vpop.permute.xlu1 %1772 }
 0xd51   :  { %1762 = vrot.lane.b32.xlu1 %v1760_v33, %s3068_s5 }
 0xd8a   :  { %v1628_v41 = vpop.xlane.xlu0 %1627 }
 0xd8b   :  { %v1887_v22 = vpop.xlane.xlu1 %1886  ;;  %v1753_v52 = vmul.f32 %v3025_v45, %v1628_v41 }
 0xd8c   :  { %v1974_v36 = vmul.f32 %v3015_v15, %v1887_v22  ;;  %v2115_v22 = vand.u32 127, %v799_v62 }
 0xd8e   :  { %1976 = vrot.lane.b32.xlu0 %v1974_v36, %s3066_s0  ;;  %v1768_v42 = vpop.permute.xlu0 %1767 }
 0xd8f   :  { %v1770_v47 = vadd.f32 %v3025_v45, %v1768_v42  ;;  %v1757_v49 = vpop.permute.xlu1 %1756 }
 0xd90   :  { %v1759_v18 = vadd.f32 %v1757_v49, %v1753_v52  ;;  %v2217_v52 = vsub.s32 1, %v3444_v63 }
 0xd91   :  { %v1775_v48 = vadd.f32 %v1773_v34, %v1770_v47  ;;  %v2132_v34 = vrot.slane %v2128_v32, %v3447_v2 }
 0xd92   :  { %1982 = vrot.lane.b32.xlu0 %v1980_v40, %s3068_s5  ;;  %v1993_v61 = vpop.permute.xlu0 %1992 }
 0xd93   :  { %3026 = vrcp.f32 %v1775_v48  ;;  %v1995_v38 = vadd.f32 %v1993_v61, %v1990_v26 }
 0xd95   :  { %3028 = vrcp.f32 %v1995_v38 }
 0xd9d   :  { %v3027_v56 = vpop.eup %3026 }
 0xd9f   :  { %v3029_v8 = vpop.eup %3028 }
 0xdcd   :  { %v1851_v50 = vpop.xlane.xlu1 %1850 }
 0xdce   :  { %v1973_v46 = vmul.f32 %v3023_v3, %v1851_v50 }
 0xdd1   :  { %v1763_v54 = vpop.permute.xlu1 %1762 }
 0xdd2   :  { %v1765_v55 = vadd.f32 %v1763_v54, %v1759_v18  ;;  %v2218_v18 = vrot.slane %v2128_v32, %v2217_v52 }
 0xdd4   :  { %v1777_v44 = vmul.f32 %v3027_v56, %v1765_v55 }
 0xdd6   :  { %2000 = vrot.lane.b32.xlu1 %v1777_v44, %s3068_s5 }
 0xe00   :  { %v1977_v28 = vpop.permute.xlu0 %1976 }
 0xe01   :  { %v1979_v5 = vadd.f32 %v1977_v28, %v1973_v46  ;;  %v2226_v46 = vld [vmem:[%s3721_s3] sm:$0xff] }
 0xe04   :  { %v1983_v6 = vpop.permute.xlu0 %1982 }
 0xe05   :  { %v1985_v7 = vadd.f32 %v1983_v6, %v1979_v5 }
 0xe07   :  { %v1997_v9 = vmul.f32 %v3029_v8, %v1985_v7 }
 0xe09   :  { %v2011_v10 = vadd.f32 %v1997_v9, %v3363_v0  ;;  %v2027_v0 = vld [vmem:[%s3722_s4 + $0x298] sm:$0xff]  ;;  %v2235_v9 = vsub.f32 1.0, %v2226_v46 }
 0xe0a   :  { %v2945_v15 = vpack.c.bf16 %v2027_v0, %v2026_v14 }
 0xe0b   :  { %v2012_v11 = vmul.f32 0.5, %v2011_v10 }
 0xe0c   :  { %2946 = vmatprep.subr.bf16.mxu1 %v2945_v15 }
 0xe0d   :  { %2014 = vrot.lane.b32.xlu0 %v2012_v11, %s3066_s0  ;;  %2948 = vmatpush3.bf16.msra.mxu1 %v2945_v15 }
 0xe0e   :  { %2950 = vmatprep.subr.bf16.mxu1 %v2949_v17 }
 0xe11   :  { %2952 = vmatpush3.bf16.msra.mxu1 %v2949_v17 }
 0xe12   :  { %2954 = vmatprep.subr.bf16.mxu1 %v2953_v19 }
 0xe15   :  { %2956 = vmatpush3.bf16.msra.mxu1 %v2953_v19 }
 0xe16   :  { %2957 = vmatprep.subr.bf16.mxu1 %v3072_v31 }
 0xe48   :  { %v2001_v35 = vpop.permute.xlu1 %2000 }
 0xe49   :  { %v2003_v59 = vadd.f32 %v2001_v35, %v3365_v1  ;;  %v3071_v1 = vmov 0  }
 0xe4a   :  { %2979 = vset.pattern.permute.xlu1 %v3071_v1 }
 0xe4b   :  { %v2004_v43 = vmul.f32 0.5, %v2003_v59 }
 0xe4d   :  { %2006 = vrot.lane.b32.xlu1 %v2004_v43, %s3066_s0 }
 0xe51   :  { %2117 = vperm.xlu1 %2979, %v2113_v29  }
 0xe55   :  { %2208 = vrot.lane.b32.xlu1 %v2132_v34, %s3066_s0 }
 0xe7f   :  { %v2015_v25 = vpop.permute.xlu0 %2014 }
 0xe80   :  { %v2017_v21 = vadd.f32 %v2015_v25, %v2010_v39 }
 0xe82   :  { %2020 = vrot.lane.b32.xlu0 %v2017_v21, %s3067_s1 }
 0xe86   :  { %2122 = vperm.xlu0 %2980, %v2120_v23  }
 0xe8a   :  { %2981 = vset.pattern.permute.xlu0 %v3071_v1 }
 0xebf   :  { %v2007_v3 = vpop.permute.xlu1 %2006 }
 0xec0   :  { %v2009_v24 = vadd.f32 %v2007_v3, %v1998_v53 }
 0xec2   :  { %v2018_v26 = vsel %vm780_vm2, %v2009_v24, 0.0 }
 0xec3   :  { %2627 = vmatprep.mubr.msk.f32.mxu1 %vm783_vm3, %v2018_v26 }
 0xed0   :  { %v2118_v36 = vpop.permute.xlu1 %2117 }
 0xed1   :  { %vm2119_vm15 = vcmp.eq.s32.totalorder %v2115_v22, %v2118_v36 }
 0xed4   :  { %v2209_v48 = vpop.permute.xlu1 %2208 }
 0xef4   :  { %v2021_v60 = vpop.permute.xlu0 %2020 }
 0xef5   :  { %v2023_v33 = vsel %vm780_vm2, 0.0, %v2021_v60 }
 0xef6   :  { %2628 = vmatmul.mubr.msk.f32.vlgmr.msra.gmra.mrb[24].mxu1 %vm783_vm3, %v2023_v33 }
 0xef7   :  { %2634 = vmatprep.mubr.msk.f32.mxu1 %vm3073_vm14, %v3069_v30 }
 0xf05   :  { %v2123_v37 = vpop.permute.xlu0 %2122 }
 0xf06   :  { %vm2124_vm0 = vcmp.eq.s32.totalorder %v2115_v22, %v2123_v37 }
 0xf07   :  { %vm2125_vm3 = vmor %vm2119_vm15, %vm2124_vm0 }
 0xf08   :  { %v2289_v42 = vsel %vm2125_vm3, 1.0, %v3069_v30 }
 0xfc9   :  { %v2629_v40 = vpop.f32.mrb[24].mxu1 }
 0xfca   :  { %v2104_v16 = vpop.f32.mrb[25].mxu1 }
 0xfcb   :  { %v2958_v41 = vpack.c.bf16 %v2629_v40, %v2104_v16 }
 0xfcd   :  { %2959 = vmatpush3.bf16.msra.mxu1 %v2958_v41 }
 0xfd0   :  { %2635 = vmatmul.mubr.msk.f32.vlgmr.msra.gmra.mrb[26].mxu1 %vm350_vm1, %v2289_v42  ;;  %vm2240_vm1 = vcmp.eq.s32.totalorder %v2115_v22, %v3444_v63 }
0x10a3   :  { %v2202_v45 = vpop.f32.mrb[26].mxu1 }
0x10a4   :  { %v2203_v47 = vadd.f32 %v2202_v45, %v2132_v34  ;;  %v2636_v2 = vpop.f32.mrb[27].mxu1 }
0x10a6   :  { %v2206_v49 = vmax.f32 %v2203_v47, 0.0 }
0x10a8   :  { %v2211_v50 = vmul.f32 %v2209_v48, %v2206_v49 }
0x10aa   :  { %v2212_v62 = vsel %vm780_vm2, %v2211_v50, 0.0  ;;  %vm2247_vm2 = vcmp.eq.s32.totalorder %v2115_v22, 8 }
0x10ab   :  { %2213 = vadd.xlane.f32.xlu1 %v2212_v62 }
0x1138   :  { %v2214_v54 = vpop.xlane.xlu1 %2213 }
0x1139   :  { %v2219_v55 = vadd.f32 %v2218_v18, %v2214_v54 }
0x113b   :  { %v2291_v56 = vmul.f32 -1.442695, %v2219_v55 }
0x113d   :  { %3030 = vpow2.f32 %v2291_v56 }
0x1147   :  { %v3031_v30 = vpop.eup %3030 }
0x1148   :  { %v2223_v44 = vadd.f32 1.0, %v3031_v30 }
0x114a   :  { %3032 = vrcp.f32 %v2223_v44 }
0x1154   :  { %v3033_v61 = vpop.eup %3032 }
0x1155   :  { %2243 = vperm.xlu0 %2981, %v3033_v61   ;;  %3034 = vlog2.f32 %v3033_v61  ;;  %v2230_v38 = vsub.f32 1.0, %v3033_v61 }
0x1157   :  { %3036 = vlog2.f32 %v2230_v38 }
0x115f   :  { %v3035_v28 = vpop.eup %3034 }
0x1160   :  { %v2228_v5 = vmul.f32 0.6931472, %v3035_v28 }
0x1161   :  { %v3037_v6 = vpop.eup %3036 }
0x1162   :  { %v2229_v7 = vmax.f32 %v2228_v5, -100.0  ;;  %v2232_v8 = vmul.f32 0.6931472, %v3037_v6 }
0x1164   :  { %v2233_v10 = vmax.f32 %v2232_v8, -100.0  ;;  %v2234_v11 = vmul.f32 %v2229_v7, %v2226_v46 }
0x1166   :  { %v2236_v12 = vmul.f32 %v2235_v9, %v2233_v10 }
0x1168   :  { %v2237_v13 = vadd.f32 %v2236_v12, %v2234_v11 }
0x116a   :  { %v2248_v14 = vsub.f32 0.0, %v2237_v13 }
0x116c   :  { %v2249_v4 = vmul.f32 0.125, %v2248_v14 }
0x116e   :  { %2252 = vperm.xlu0 %2981, %v2249_v4  }
0x11d4   :  { %v2244_v0 = vpop.permute.xlu0 %2243 }
0x11d5   :  { %v2246_v57 = vsel %vm2240_vm1, %v2244_v0, 0.0 }
0x11ed   :  { %v2253_v15 = vpop.permute.xlu0 %2252 }
0x11ee   :  { %v2255_v51 = vsel %vm2247_vm2, %v2253_v15, 0.0 }
0x11ef   :  { %v2256_v35 = vadd.f32 %v2255_v51, %v2246_v57 }
0x11f1   :  { %v2257_v17 = vrot.slane %v2256_v35, 4 }
0x11f3   :  { %v2258_v59 = vadd.f32 %v2257_v17, %v2256_v35 }
0x11f5   :  { %v2259_v58 = vrot.slane %v2258_v59, 2 }
0x11f7   :  { %v2260_v27 = vadd.f32 %v2259_v58, %v2258_v59 }
0x11f9   :  { %v2261_v43 = vrot.slane %v2260_v27, 1 }
0x11fb   :  { %v2262_v19 = vadd.f32 %v2261_v43, %v2260_v27 }
0x11fd   :  { %2263 = vst [vmem:[%s3724_s6] sm:$0x1] %v2262_v19 }
0x11fe   :  { %2268 = vsyncpa [#allocation3], 1 }

</bundles_post_ra>
